<compile_context>
chip_gen: v7x
topology: tpu7x:2x2x1
jax: 0.10.0
libtpu: 0.0.40
codegen_flags: <defaults>
</compile_context>

<pallas_src>
import jax
import jax.numpy as jnp
from jax.experimental import pallas as pl
from jax.experimental.pallas import tpu as pltpu

INPUT_SIZE = 1
OUTPUT_SIZE = 1
HIDDEN1 = 100
HIDDEN2 = 200
HID1_PAD = 128   # 100 padded up to a lane multiple
HID2_PAD = 256   # 200 padded up to a lane multiple


def autoencoder_kernel(x_ref,
                       w1_ref, b1_ref,
                       w2_ref, b2_ref,
                       w3_ref, b3_ref,
                       w4_ref, b4_ref,
                       w5_ref, b5_ref,
                       o_ref):
    # x: (1, TB)  -- batch on lanes, feature dim (=1) on sublanes.
    x = x_ref[...]

    # layer 1 + relu: K=1 contraction -> VPU broadcast outer product.
    # (HID1_PAD, 1) * (1, TB) + (HID1_PAD, 1)  ->  (HID1_PAD, TB)
    h = w1_ref[...] * x + b1_ref[...]
    h = jnp.maximum(h, 0.0)

    # layer 2 + relu: (HID2_PAD, HID1_PAD) @ (HID1_PAD, TB) -> (HID2_PAD, TB)
    h = jnp.dot(w2_ref[...], h, preferred_element_type=jnp.float32) + b2_ref[...]
    h = jnp.maximum(h, 0.0)

    # layer 3 + relu: (HID2_PAD, HID2_PAD) @ (HID2_PAD, TB) -> (HID2_PAD, TB)
    h = jnp.dot(w3_ref[...], h, preferred_element_type=jnp.float32) + b3_ref[...]
    h = jnp.maximum(h, 0.0)

    # layer 4 + sigmoid: (HID1_PAD, HID2_PAD) @ (HID2_PAD, TB) -> (HID1_PAD, TB)
    h = jnp.dot(w4_ref[...], h, preferred_element_type=jnp.float32) + b4_ref[...]
    h = jax.nn.sigmoid(h)

    # layer 5 (no activation): N=1 output -> VPU multiply + sublane reduce.
    # (HID1_PAD, TB) * (HID1_PAD, 1) summed over features -> (1, TB)
    out = jnp.sum(h * w5_ref[...], axis=0, keepdims=True) + b5_ref[...]
    o_ref[...] = out.astype(o_ref.dtype)


def _pad_to(a, shape):
    pads = [(0, s - d) for d, s in zip(a.shape, shape)]
    return jnp.pad(a, pads)


def pack_params(params):
    """Transpose to feature-major (out, in) and zero-pad to lane multiples."""
    w1 = _pad_to(params["w1"].T, (HID1_PAD, INPUT_SIZE))   # (128, 1)
    b1 = _pad_to(params["b1"].T, (HID1_PAD, 1))            # (128, 1)
    w2 = _pad_to(params["w2"].T, (HID2_PAD, HID1_PAD))     # (256, 128)
    b2 = _pad_to(params["b2"].T, (HID2_PAD, 1))            # (256, 1)
    w3 = _pad_to(params["w3"].T, (HID2_PAD, HID2_PAD))     # (256, 256)
    b3 = _pad_to(params["b3"].T, (HID2_PAD, 1))            # (256, 1)
    w4 = _pad_to(params["w4"].T, (HID1_PAD, HID2_PAD))     # (128, 256)
    b4 = _pad_to(params["b4"].T, (HID1_PAD, 1))            # (128, 1)
    w5 = _pad_to(params["w5"], (HID1_PAD, OUTPUT_SIZE))    # (128, 1)
    b5 = params["b5"].T                                     # (1, 1)
    return (w1, b1, w2, b2, w3, b3, w4, b4, w5, b5)


def autoencoder_forward(x, params, *, batch_tile=256):
    """x: (B, 1) float32. params: (in, out) weights and (1, out) biases."""
    B, in_f = x.shape
    assert in_f == INPUT_SIZE
    assert batch_tile % 128 == 0, "batch_tile must be a lane multiple"

    # Pad the batch up to a multiple of the tile, put batch on the lane dim.
    B_pad = pl.cdiv(B, batch_tile) * batch_tile
    x_t = jnp.pad(x, ((0, B_pad - B), (0, 0))).T            # (1, B_pad), lane-dense

    kparams = pack_params(params)

    grid = (B_pad // batch_tile,)

    def full_spec(arr):
        # Whole-array block, kept resident in VMEM across batch tiles.
        return pl.BlockSpec(arr.shape, lambda i: (0, 0))

    out_t = pl.pallas_call(
        autoencoder_kernel,
        out_shape=jax.ShapeDtypeStruct((1, B_pad), x.dtype),
        grid_spec=pltpu.PrefetchScalarGridSpec(
            num_scalar_prefetch=0,
            grid=grid,
            in_specs=[pl.BlockSpec((1, batch_tile), lambda i: (0, i))]
                     + [full_spec(p) for p in kparams],
            out_specs=pl.BlockSpec((1, batch_tile), lambda i: (0, i)),
        ),
        compiler_params=pltpu.CompilerParams(
            dimension_semantics=("parallel",),
        ),
    )(x_t, *kparams)

    return out_t[:, :B].T                                    # back to (B, 1)


def init_params(key):
    """Deterministic init mimicking PyTorch nn.Linear (uniform +/- 1/sqrt(fan_in)).
    Weights stored as (in_features, out_features); biases as (1, out_features)."""
    dims = [(INPUT_SIZE, HIDDEN1),
            (HIDDEN1, HIDDEN2),
            (HIDDEN2, HIDDEN2),
            (HIDDEN2, HIDDEN1),
            (HIDDEN1, OUTPUT_SIZE)]
    params = {}
    for idx, (fan_in, fan_out) in enumerate(dims, start=1):
        key, kw, kb = jax.random.split(key, 3)
        bound = 1.0 / jnp.sqrt(jnp.float32(fan_in))
        params[f"w{idx}"] = jax.random.uniform(
            kw, (fan_in, fan_out), jnp.float32, -bound, bound)
        params[f"b{idx}"] = jax.random.uniform(
            kb, (1, fan_out), jnp.float32, -bound, bound)
    return params


def autoencoder_reference(x, params):
    """Pure-JAX reference of the PyTorch forward pass."""
    h = jax.nn.relu(x @ params["w1"] + params["b1"])
    h = jax.nn.relu(h @ params["w2"] + params["b2"])
    h = jax.nn.relu(h @ params["w3"] + params["b3"])
    h = jax.nn.sigmoid(h @ params["w4"] + params["b4"])
    return h @ params["w5"] + params["b5"]


if __name__ == "__main__":
    key = jax.random.PRNGKey(0)
    key, kx = jax.random.split(key)

    B = 512  # batch of scalar samples; 2 grid steps of 256 (keeps both v7x TCs busy)
    x = jax.random.normal(kx, (B, INPUT_SIZE), jnp.float32)

    params = init_params(key)

    out = autoencoder_forward(x, params, batch_tile=256)
    out = jax.block_until_ready(out)

    ref = autoencoder_reference(x, params)
    assert out.shape == (B, OUTPUT_SIZE)
    assert jnp.allclose(out, ref, atol=1e-5, rtol=1e-4), "mismatch vs JAX reference"

    print("KERNEL_OK")
</pallas_src>

<mosaic_0001>
module attributes {stable_mosaic.version = 11 : i64} {
  func.func @autoencoder_kernel(%arg0: i32, %arg1: memref<1x256xf32, #tpu.memory_space<vmem>>, %arg2: memref<128x1xf32, #tpu.memory_space<vmem>>, %arg3: memref<128x1xf32, #tpu.memory_space<vmem>>, %arg4: memref<256x128xf32, #tpu.memory_space<vmem>>, %arg5: memref<256x1xf32, #tpu.memory_space<vmem>>, %arg6: memref<256x256xf32, #tpu.memory_space<vmem>>, %arg7: memref<256x1xf32, #tpu.memory_space<vmem>>, %arg8: memref<128x256xf32, #tpu.memory_space<vmem>>, %arg9: memref<128x1xf32, #tpu.memory_space<vmem>>, %arg10: memref<128x1xf32, #tpu.memory_space<vmem>>, %arg11: memref<1x1xf32, #tpu.memory_space<vmem>>, %arg12: memref<1x256xf32, #tpu.memory_space<vmem>>) attributes {dimension_semantics = [#tpu.dimension_semantics<parallel>], iteration_bounds = array<i64: 2>, scalar_prefetch = 0 : i64, scratch_operands = 0 : i64, tpu.core_type = #tpu.core_type<tc>, window_params = [{transform_indices = @transform_0, window_bounds = array<i64: 1, 256>}, {pipeline_mode = #tpu.pipeline_mode<synchronous>, transform_indices = @transform_1, window_bounds = array<i64: 128, 1>}, {pipeline_mode = #tpu.pipeline_mode<synchronous>, transform_indices = @transform_2, window_bounds = array<i64: 128, 1>}, {pipeline_mode = #tpu.pipeline_mode<synchronous>, transform_indices = @transform_3, window_bounds = array<i64: 256, 128>}, {pipeline_mode = #tpu.pipeline_mode<synchronous>, transform_indices = @transform_4, window_bounds = array<i64: 256, 1>}, {pipeline_mode = #tpu.pipeline_mode<synchronous>, transform_indices = @transform_5, window_bounds = array<i64: 256, 256>}, {pipeline_mode = #tpu.pipeline_mode<synchronous>, transform_indices = @transform_6, window_bounds = array<i64: 256, 1>}, {pipeline_mode = #tpu.pipeline_mode<synchronous>, transform_indices = @transform_7, window_bounds = array<i64: 128, 256>}, {pipeline_mode = #tpu.pipeline_mode<synchronous>, transform_indices = @transform_8, window_bounds = array<i64: 128, 1>}, {pipeline_mode = #tpu.pipeline_mode<synchronous>, transform_indices = @transform_9, window_bounds = array<i64: 128, 1>}, {pipeline_mode = #tpu.pipeline_mode<synchronous>, transform_indices = @transform_10, window_bounds = array<i64: 1, 1>}, {transform_indices = @transform_11, window_bounds = array<i64: 1, 256>}]} {
    %c0 = arith.constant 0 : index
    %c0_0 = arith.constant 0 : index
    %0 = vector.load %arg1[%c0, %c0_0] : memref<1x256xf32, #tpu.memory_space<vmem>>, vector<1x256xf32>
    %c0_1 = arith.constant 0 : index
    %c0_2 = arith.constant 0 : index
    %1 = vector.load %arg2[%c0_1, %c0_2] : memref<128x1xf32, #tpu.memory_space<vmem>>, vector<128x1xf32>
    %2 = vector.broadcast %1 : vector<128x1xf32> to vector<128x256xf32>
    %3 = vector.broadcast %0 : vector<1x256xf32> to vector<128x256xf32>
    %4 = arith.mulf %2, %3 : vector<128x256xf32>
    %c0_3 = arith.constant 0 : index
    %c0_4 = arith.constant 0 : index
    %5 = vector.load %arg3[%c0_3, %c0_4] : memref<128x1xf32, #tpu.memory_space<vmem>>, vector<128x1xf32>
    %6 = vector.broadcast %5 : vector<128x1xf32> to vector<128x256xf32>
    %7 = arith.addf %4, %6 : vector<128x256xf32>
    %cst = arith.constant 0.000000e+00 : f32
    %8 = vector.broadcast %cst : f32 to vector<128x256xf32>
    %9 = arith.maximumf %7, %8 : vector<128x256xf32>
    %c0_5 = arith.constant 0 : index
    %c0_6 = arith.constant 0 : index
    %10 = vector.load %arg4[%c0_5, %c0_6] : memref<256x128xf32, #tpu.memory_space<vmem>>, vector<256x128xf32>
    %cst_7 = arith.constant dense<0.000000e+00> : vector<256x256xf32>
    %11 = tpu.matmul %10, %9, %cst_7 {dimension_numbers = #tpu.dot_dimension_numbers<[1], [0], [0], [1], [0, 0, 1, 1], [], []>} : vector<256x128xf32>, vector<128x256xf32>, vector<256x256xf32> -> vector<256x256xf32>
    %c0_8 = arith.constant 0 : index
    %c0_9 = arith.constant 0 : index
    %12 = vector.load %arg5[%c0_8, %c0_9] : memref<256x1xf32, #tpu.memory_space<vmem>>, vector<256x1xf32>
    %13 = vector.broadcast %12 : vector<256x1xf32> to vector<256x256xf32>
    %14 = arith.addf %11, %13 : vector<256x256xf32>
    %cst_10 = arith.constant 0.000000e+00 : f32
    %15 = vector.broadcast %cst_10 : f32 to vector<256x256xf32>
    %16 = arith.maximumf %14, %15 : vector<256x256xf32>
    %c0_11 = arith.constant 0 : index
    %c0_12 = arith.constant 0 : index
    %17 = vector.load %arg6[%c0_11, %c0_12] : memref<256x256xf32, #tpu.memory_space<vmem>>, vector<256x256xf32>
    %cst_13 = arith.constant dense<0.000000e+00> : vector<256x256xf32>
    %18 = tpu.matmul %17, %16, %cst_13 {dimension_numbers = #tpu.dot_dimension_numbers<[1], [0], [0], [1], [0, 0, 1, 1], [], []>} : vector<256x256xf32>, vector<256x256xf32>, vector<256x256xf32> -> vector<256x256xf32>
    %c0_14 = arith.constant 0 : index
    %c0_15 = arith.constant 0 : index
    %19 = vector.load %arg7[%c0_14, %c0_15] : memref<256x1xf32, #tpu.memory_space<vmem>>, vector<256x1xf32>
    %20 = vector.broadcast %19 : vector<256x1xf32> to vector<256x256xf32>
    %21 = arith.addf %18, %20 : vector<256x256xf32>
    %cst_16 = arith.constant 0.000000e+00 : f32
    %22 = vector.broadcast %cst_16 : f32 to vector<256x256xf32>
    %23 = arith.maximumf %21, %22 : vector<256x256xf32>
    %c0_17 = arith.constant 0 : index
    %c0_18 = arith.constant 0 : index
    %24 = vector.load %arg8[%c0_17, %c0_18] : memref<128x256xf32, #tpu.memory_space<vmem>>, vector<128x256xf32>
    %cst_19 = arith.constant dense<0.000000e+00> : vector<128x256xf32>
    %25 = tpu.matmul %24, %23, %cst_19 {dimension_numbers = #tpu.dot_dimension_numbers<[1], [0], [0], [1], [0, 0, 1, 1], [], []>} : vector<128x256xf32>, vector<256x256xf32>, vector<128x256xf32> -> vector<128x256xf32>
    %c0_20 = arith.constant 0 : index
    %c0_21 = arith.constant 0 : index
    %26 = vector.load %arg9[%c0_20, %c0_21] : memref<128x1xf32, #tpu.memory_space<vmem>>, vector<128x1xf32>
    %27 = vector.broadcast %26 : vector<128x1xf32> to vector<128x256xf32>
    %28 = arith.addf %25, %27 : vector<128x256xf32>
    %29 = arith.negf %28 : vector<128x256xf32>
    %30 = math.exp %29 : vector<128x256xf32>
    %cst_22 = arith.constant 1.000000e+00 : f32
    %31 = vector.broadcast %cst_22 : f32 to vector<128x256xf32>
    %32 = arith.addf %31, %30 : vector<128x256xf32>
    %33 = arith.divf %31, %32 : vector<128x256xf32>
    %c0_23 = arith.constant 0 : index
    %c0_24 = arith.constant 0 : index
    %34 = vector.load %arg10[%c0_23, %c0_24] : memref<128x1xf32, #tpu.memory_space<vmem>>, vector<128x1xf32>
    %35 = vector.broadcast %34 : vector<128x1xf32> to vector<128x256xf32>
    %36 = arith.mulf %33, %35 : vector<128x256xf32>
    %cst_25 = arith.constant dense<0.000000e+00> : vector<256xf32>
    %37 = vector.multi_reduction <add>, %36, %cst_25 [0] : vector<128x256xf32> to vector<256xf32>
    %38 = vector.shape_cast %37 : vector<256xf32> to vector<1x256xf32>
    %c0_26 = arith.constant 0 : index
    %c0_27 = arith.constant 0 : index
    %39 = vector.load %arg11[%c0_26, %c0_27] : memref<1x1xf32, #tpu.memory_space<vmem>>, vector<1x1xf32>
    %40 = vector.broadcast %39 : vector<1x1xf32> to vector<1x256xf32>
    %41 = arith.addf %38, %40 : vector<1x256xf32>
    %c0_28 = arith.constant 0 : index
    %c0_29 = arith.constant 0 : index
    %42 = vector.load %arg12[%c0_28, %c0_29] : memref<1x256xf32, #tpu.memory_space<vmem>>, vector<1x256xf32>
    tpu.vector_store %arg12[%c0_28, %c0_29], %41 {strides = array<i32>} : memref<1x256xf32, #tpu.memory_space<vmem>>, vector<1x256xf32>,
    return
  }
  func.func @transform_0(%arg0: i32) -> (i32, i32) {
    %c0_i32 = arith.constant 0 : i32
    %c0_i32_0 = arith.constant 0 : i32
    return %c0_i32, %arg0 : i32, i32
  }
  func.func @transform_1(%arg0: i32) -> (i32, i32) {
    %c0_i32 = arith.constant 0 : i32
    %c0_i32_0 = arith.constant 0 : i32
    %c0_i32_1 = arith.constant 0 : i32
    return %c0_i32, %c0_i32_0 : i32, i32
  }
  func.func @transform_2(%arg0: i32) -> (i32, i32) {
    %c0_i32 = arith.constant 0 : i32
    %c0_i32_0 = arith.constant 0 : i32
    %c0_i32_1 = arith.constant 0 : i32
    return %c0_i32, %c0_i32_0 : i32, i32
  }
  func.func @transform_3(%arg0: i32) -> (i32, i32) {
    %c0_i32 = arith.constant 0 : i32
    %c0_i32_0 = arith.constant 0 : i32
    %c0_i32_1 = arith.constant 0 : i32
    return %c0_i32, %c0_i32_0 : i32, i32
  }
  func.func @transform_4(%arg0: i32) -> (i32, i32) {
    %c0_i32 = arith.constant 0 : i32
    %c0_i32_0 = arith.constant 0 : i32
    %c0_i32_1 = arith.constant 0 : i32
    return %c0_i32, %c0_i32_0 : i32, i32
  }
  func.func @transform_5(%arg0: i32) -> (i32, i32) {
    %c0_i32 = arith.constant 0 : i32
    %c0_i32_0 = arith.constant 0 : i32
    %c0_i32_1 = arith.constant 0 : i32
    return %c0_i32, %c0_i32_0 : i32, i32
  }
  func.func @transform_6(%arg0: i32) -> (i32, i32) {
    %c0_i32 = arith.constant 0 : i32
    %c0_i32_0 = arith.constant 0 : i32
    %c0_i32_1 = arith.constant 0 : i32
    return %c0_i32, %c0_i32_0 : i32, i32
  }
  func.func @transform_7(%arg0: i32) -> (i32, i32) {
    %c0_i32 = arith.constant 0 : i32
    %c0_i32_0 = arith.constant 0 : i32
    %c0_i32_1 = arith.constant 0 : i32
    return %c0_i32, %c0_i32_0 : i32, i32
  }
  func.func @transform_8(%arg0: i32) -> (i32, i32) {
    %c0_i32 = arith.constant 0 : i32
    %c0_i32_0 = arith.constant 0 : i32
    %c0_i32_1 = arith.constant 0 : i32
    return %c0_i32, %c0_i32_0 : i32, i32
  }
  func.func @transform_9(%arg0: i32) -> (i32, i32) {
    %c0_i32 = arith.constant 0 : i32
    %c0_i32_0 = arith.constant 0 : i32
    %c0_i32_1 = arith.constant 0 : i32
    return %c0_i32, %c0_i32_0 : i32, i32
  }
  func.func @transform_10(%arg0: i32) -> (i32, i32) {
    %c0_i32 = arith.constant 0 : i32
    %c0_i32_0 = arith.constant 0 : i32
    %c0_i32_1 = arith.constant 0 : i32
    return %c0_i32, %c0_i32_0 : i32, i32
  }
  func.func @transform_11(%arg0: i32) -> (i32, i32) {
    %c0_i32 = arith.constant 0 : i32
    %c0_i32_0 = arith.constant 0 : i32
    return %c0_i32, %arg0 : i32, i32
  }
}

</mosaic_0001>

<bundles_post_ra>
// kernel: tpu_custom_call.1
= control target key start
LH: loop header
LB: loop body
LE: loop exit
PB: predicated region body
PF: predicated region fallthrough
CT: control target
= control target key end

     0   :  { %s4135_s0 = inlined_call_operand.vmem [shape: f32[1,512], index: 0, kind: input, shape index: {}]   ;;  %s4136_s1 = inlined_call_operand.vmem [shape: f32[128,1], index: 1, kind: input, shape index: {}]   ;;  %s4137_s2 = inlined_call_operand.vmem [shape: f32[128,1], index: 2, kind: input, shape index: {}]   ;;  %s4138_s3 = inlined_call_operand.vmem [shape: f32[256,128], index: 3, kind: input, shape index: {}]   ;;  %s4139_s4 = inlined_call_operand.vmem [shape: f32[256,1], index: 4, kind: input, shape index: {}]   ;;  %s4140_s5 = inlined_call_operand.vmem [shape: f32[256,256], index: 5, kind: input, shape index: {}]   ;;  %s4141_s6 = inlined_call_operand.vmem [shape: f32[256,1], index: 6, kind: input, shape index: {}]   ;;  %s4142_s7 = inlined_call_operand.vmem [shape: f32[128,256], index: 7, kind: input, shape index: {}]   ;;  %s4143_s8 = inlined_call_operand.vmem [shape: f32[128,1], index: 8, kind: input, shape index: {}]   ;;  %s4144_s9 = inlined_call_operand.vmem [shape: f32[128,1], index: 9, kind: input, shape index: {}]   ;;  %s4145_s10 = inlined_call_operand.<no memory space> [shape: f32[1,1], index: 10, kind: input, shape index: {}]   ;;  %s4146_s11 = inlined_call_operand.hbm [shape: f32[1,512], index: 11, kind: output, shape index: {}]  }
   0x1   :  { %v16_v0 = vstv %s4145_s10 }
   0x2   :  { %17 = vst [vmem:[#allocation2] sm:$0x1] %v16_v0 }
   0x3   :  { %18 = vsyncpa [#allocation4], 0 }
   0x4   :  { %20 = vsyncpa [#allocation4 + $0x1], 0  ;;  %s3105_s19 = smov 0   ;;  %s3107_s20 = smov 0  }
   0x5   :  { %s3109_s21 = smov 0   ;;  %s3111_s22 = smov 0  }
   0x6 LB: > { %s3126_s10 = sadd.s32 4294967295, %s3036_s22   ;;  %s2566_s23 = sadd.s32 4294967294, %s3036_s22   ;;  %s3036_s22 = sphi %s3111_s22, %s4152_s22   ;;  %s3032_s21 = sphi %s3109_s21, %s4151_s21   ;;  %s3028_s20 = sphi %s3107_s20, %s4150_s20   ;;  %s3024_s19 = sphi %s3105_s19, %s4149_s19  }
   0x7   : > { %s3130_s24 = sadd.s32 1, %s3036_s22   ;;  %s269_s25 = sadd.s32 1, %s3032_s21 }
   0x8   : > { %s266_s26 = ssub.s32 %s3036_s22, %s3130_s24  ;;  %p279_p0 = scmp.ne.s32.totalorder %s3032_s21, %s3028_s20 }
   0x9   : > { %p267_p1 = scmp.eq.s32.totalorder %s266_s26, 0  ;;  %p280_p2 = scmp.eq.s32.totalorder %s3126_s10, 1 }
   0xa   : > { %p285_p3 = scmp.ne.s32.totalorder %s3028_s20, %s3024_s19  ;;  %p286_p4 = scmp.eq.s32.totalorder %s2566_s23, 1 }
   0xb   : > { %s3141_s27 = scalar_select %p267_p1, %s3032_s21, %s269_s25  }
   0xc   : > { %p3143_p5 = por %p280_p2, %p279_p0  ;;  %p3147_p6 = por %p286_p4, %p285_p3 }
   0xd   : > { %p2569_p7 = scmp.ge.s32.totalorder %s3036_s22, 1  ;;  %p342_p8 = scmp.lt.s32.totalorder %s3036_s22, 3 }
   0xf   : > { %p343_p9 = pnand %p2569_p7, %p342_p8 }
  0x10   : > { %v527_v1 = vld [vmem:[%s4137_s2] sm:$0xff] (!%p343_p9)  ;;  %v3038_v3 = vmov (!%p343_p9), 0   ;;  %v528_v4 = vld [vmem:[%s4137_s2 + $0x8] sm:$0xff] (!%p343_p9)  ;;  %v391_v6 = vld [vmem:[%s4136_s1 + $0x18] sm:$0xff] (!%p343_p9)  ;;  %v3039_v40 = vmov (!%p343_p9), 0.0   ;;  %s2571_s13 = sshll.u32 (!%p343_p9), %s3126_s10, 1  ;;  %v485_v63 = vlaneseq (!%p343_p9) }
  0x11   : > { %346 = sbr.rel (%p343_p9) target bundleno = 1253 (0x4e5), region = 64  ;;  %v388_v2 = vld [vmem:[%s4136_s1] sm:$0xff] (!%p343_p9)  ;;  %2845 = vset.pattern.permute.xlu1 (!%p343_p9), %v3038_v3  ;;  %2844 = vset.pattern.permute.xlu0 (!%p343_p9), %v3038_v3  ;;  %v389_v5 = vld [vmem:[%s4136_s1 + $0x8] sm:$0xff] (!%p343_p9)  ;;  %v390_v7 = vld [vmem:[%s4136_s1 + $0x10] sm:$0xff] (!%p343_p9)  ;;  %p382_p10 = scmp.lt.s32.totalorder (!%p343_p9), %s2571_s13, 3 }
  0x12   : > { %545 = vperm.xlu1 (!%p343_p9), %2845, %v527_v1   ;;  %406 = vperm.xlu0 (!%p343_p9), %2844, %v388_v2   ;;  %v530_v8 = vld [vmem:[%s4137_s2 + $0x18] sm:$0xff] (!%p343_p9)  ;;  %v529_v9 = vld [vmem:[%s4137_s2 + $0x10] sm:$0xff] (!%p343_p9)  ;;  %v393_v10 = vld [vmem:[%s4136_s1 + $0x28] sm:$0xff] (!%p343_p9)  ;;  %v3342_v2 = vshrl.u32 (!%p343_p9), %v485_v63, 7  ;;  %s378_s30 = sand.u32 (!%p343_p9), 1, %s3028_s20   ;;  %s2609_s12 = sshll.u32 (!%p343_p9), %s3126_s10, 5 }
  0x13   : > { %v392_v11 = vld [vmem:[%s4136_s1 + $0x20] sm:$0xff] (!%p343_p9)  ;;  %v532_v12 = vld [vmem:[%s4137_s2 + $0x28] sm:$0xff] (!%p343_p9)  ;;  %v395_v14 = vld [vmem:[%s4136_s1 + $0x38] sm:$0xff] (!%p343_p9)  ;;  %975 = vmatprep.mubr.f32.mxu0 (!%p343_p9), %v3039_v40  ;;  %vm2492_vm0 = vcmp.lt.s32.totalorder (!%p343_p9), %v485_v63, 256  ;;  %s2496_s23 = scalar_lea.sflag (!%p343_p9), [#allocation4], %s378_s30  ;;  %s3041_s10 = smov (!%p343_p9), [#allocation3]  }
  0x14   : > { %v531_v13 = vld [vmem:[%s4137_s2 + $0x20] sm:$0xff] (!%p343_p9)  ;;  %v394_v15 = vld [vmem:[%s4136_s1 + $0x30] sm:$0xff] (!%p343_p9)  ;;  %v534_v16 = vld [vmem:[%s4137_s2 + $0x38] sm:$0xff] (!%p343_p9)  ;;  %s2978_s26 = sshll.u32 (!%p343_p9), %s3041_s10, 4  ;;  %s2979_s26 = int_to_ptr.vmem [resolvable:$false] %s2978_s26 }
  0x15   : > { %v533_v17 = vld [vmem:[%s4137_s2 + $0x30] sm:$0xff] (!%p343_p9)  ;;  %v397_v18 = vld [vmem:[%s4136_s1 + $0x48] sm:$0xff] (!%p343_p9)  ;;  %v396_v19 = vld [vmem:[%s4136_s1 + $0x40] sm:$0xff] (!%p343_p9) }
  0x16   : > { %550 = vperm.xlu1 (!%p343_p9), %2845, %v528_v4   ;;  %411 = vperm.xlu0 (!%p343_p9), %2844, %v389_v5   ;;  %v536_v20 = vld [vmem:[%s4137_s2 + $0x48] sm:$0xff] (!%p343_p9)  ;;  %v535_v21 = vld [vmem:[%s4137_s2 + $0x40] sm:$0xff] (!%p343_p9)  ;;  %v399_v22 = vld [vmem:[%s4136_s1 + $0x58] sm:$0xff] (!%p343_p9)  ;;  %v487_v5 = vsub.s32 (!%p343_p9), 0, %v3342_v2 }
  0x17   : > { %v398_v23 = vld [vmem:[%s4136_s1 + $0x50] sm:$0xff] (!%p343_p9)  ;;  %v538_v24 = vld [vmem:[%s4137_s2 + $0x58] sm:$0xff] (!%p343_p9)  ;;  %v401_v26 = vld [vmem:[%s4136_s1 + $0x68] sm:$0xff] (!%p343_p9) }
  0x18   : > { %v537_v25 = vld [vmem:[%s4137_s2 + $0x50] sm:$0xff]  ;;  %v400_v27 = vld [vmem:[%s4136_s1 + $0x60] sm:$0xff]  ;;  %v540_v28 = vld [vmem:[%s4137_s2 + $0x68] sm:$0xff]  ;;  %s4154_s13 = smov (!%p382_p10, %s2571_s13), 3 }
  0x19   : > { %v539_v29 = vld [vmem:[%s4137_s2 + $0x60] sm:$0xff]  ;;  %v403_v30 = vld [vmem:[%s4136_s1 + $0x78] sm:$0xff]  ;;  %v402_v31 = vld [vmem:[%s4136_s1 + $0x70] sm:$0xff]  ;;  %s384_s18 = scalar_lea.vmem %s4135_s0, %s4154_s13  ;;  %s2570_s13 = sshll.u32 %s378_s30, 1 }
  0x1a   : > { %421 = vperm.xlu1 %2845, %v391_v6   ;;  %416 = vperm.xlu0 %2844, %v390_v7   ;;  %v542_v32 = vld [vmem:[%s4137_s2 + $0x78] sm:$0xff]  ;;  %v541_v33 = vld [vmem:[%s4137_s2 + $0x70] sm:$0xff]  ;;  %v720_v34 = vld [vmem:[%s4139_s4 + $0x8] sm:$0xff]  ;;  %v491_v6 = vsub.s32 1, %v3342_v2  ;;  %s380_s14 = scalar_lea.vmem [#allocation3], %s2570_s13  ;;  %s2980_s13 = scalar_lea.vmem %s2979_s26, 64 }
  0x1b   : > { %v719_v35 = vld [vmem:[%s4139_s4] sm:$0xff]  ;;  %v722_v36 = vld [vmem:[%s4139_s4 + $0x18] sm:$0xff]  ;;  %v721_v37 = vld [vmem:[%s4139_s4 + $0x10] sm:$0xff]  ;;  %s2510_s15 = sshll.u32 %s380_s14, 4  ;;  %s4095_s15 = int_to_ptr.vmem [resolvable:$true] %s2510_s15 }
  0x1c   : > { %v724_v38 = vld [vmem:[%s4139_s4 + $0x28] sm:$0xff]  ;;  %v723_v39 = vld [vmem:[%s4139_s4 + $0x20] sm:$0xff]  ;;  %v726_v41 = vld [vmem:[%s4139_s4 + $0x38] sm:$0xff]  ;;  %s2974_s25 = scalar_lea.vmem %s4095_s15, 32  ;;  %p2981_p0 = scmp.lt.s32.totalorder %s4095_s15, %s2979_s26 }
  0x1d   : > { %v725_v42 = vld [vmem:[%s4139_s4 + $0x30] sm:$0xff]  ;;  %v728_v43 = vld [vmem:[%s4139_s4 + $0x48] sm:$0xff]  ;;  %v727_v44 = vld [vmem:[%s4139_s4 + $0x40] sm:$0xff]  ;;  %p2975_p11 = scmp.ne.s32.totalorder %s4095_s15, %s2974_s25  ;;  %p2982_p1 = scmp.lt.s32.totalorder %s2980_s13, %s2974_s25 }
  0x1e   : > { %560 = vperm.xlu1 %2845, %v530_v8   ;;  %555 = vperm.xlu0 %2844, %v529_v9   ;;  %v730_v45 = vld [vmem:[%s4139_s4 + $0x58] sm:$0xff]  ;;  %v729_v46 = vld [vmem:[%s4139_s4 + $0x50] sm:$0xff]  ;;  %v732_v47 = vld [vmem:[%s4139_s4 + $0x68] sm:$0xff] }
  0x1f   : > { %v731_v48 = vld [vmem:[%s4139_s4 + $0x60] sm:$0xff]  ;;  %v734_v49 = vld [vmem:[%s4139_s4 + $0x78] sm:$0xff]  ;;  %v733_v50 = vld [vmem:[%s4139_s4 + $0x70] sm:$0xff]  ;;  %p2976_p12 = pnand %p2975_p11, %p3143_p5  ;;  %p2983_p2 = por %p2982_p1, %p2981_p0 }
  0x20   : > { %v736_v51 = vld [vmem:[%s4139_s4 + $0x88] sm:$0xff]  ;;  %v735_v52 = vld [vmem:[%s4139_s4 + $0x80] sm:$0xff]  ;;  %v738_v53 = vld [vmem:[%s4139_s4 + $0x98] sm:$0xff] }
  0x21   : > { %v737_v54 = vld [vmem:[%s4139_s4 + $0x90] sm:$0xff]  ;;  %v740_v55 = vld [vmem:[%s4139_s4 + $0xa8] sm:$0xff]  ;;  %v739_v56 = vld [vmem:[%s4139_s4 + $0xa0] sm:$0xff]  ;;  %p2977_p13 = pneg %p2976_p12 }
  0x22   : > { %431 = vperm.xlu1 %2845, %v393_v10   ;;  %426 = vperm.xlu0 %2844, %v392_v11   ;;  %v742_v57 = vld [vmem:[%s4139_s4 + $0xb8] sm:$0xff]  ;;  %v741_v58 = vld [vmem:[%s4139_s4 + $0xb0] sm:$0xff]  ;;  %v744_v59 = vld [vmem:[%s4139_s4 + $0xc8] sm:$0xff] }
  0x23   : > { %v743_v60 = vld [vmem:[%s4139_s4 + $0xc0] sm:$0xff]  ;;  %v746_v61 = vld [vmem:[%s4139_s4 + $0xd8] sm:$0xff]  ;;  %v745_v62 = vld [vmem:[%s4139_s4 + $0xd0] sm:$0xff]  ;;  %p2984_p3 = pnand %p2983_p2, %p2977_p13 }
  0x24   : > { %v748_v0 = vld [vmem:[%s4139_s4 + $0xe8] sm:$0xff]  ;;  %v747_v1 = vld [vmem:[%s4139_s4 + $0xe0] sm:$0xff]  ;;  %v750_v3 = vld [vmem:[%s4139_s4 + $0xf8] sm:$0xff] }
  0x25   : > { %v749_v4 = vld [vmem:[%s4139_s4 + $0xf0] sm:$0xff]  ;;  %v387_v7 = vld [vmem:[%s384_s18] sm:$0x3]  ;;  %v1297_v10 = vld [vmem:[%s4141_s6 + $0x8] sm:$0xff]  ;;  %s4093_s18 = scalar_lea.hbm %s4146_s11, %s2609_s12 }
  0x26   : > { %570 = vperm.xlu1 %2845, %v532_v12   ;;  %565 = vperm.xlu0 %2844, %v531_v13   ;;  %v3357_v8 = vrot.slane %v387_v7, %v487_v5  ;;  %v3359_v9 = vrot.slane %v387_v7, %v491_v6  ;;  %v1296_v11 = vld [vmem:[%s4141_s6] sm:$0xff] }
  0x2a   : > { %441 = vperm.xlu1 %2845, %v395_v14   ;;  %436 = vperm.xlu0 %2844, %v394_v15  }
  0x2e   : > { %580 = vperm.xlu1 %2845, %v534_v16   ;;  %575 = vperm.xlu0 %2844, %v533_v17   ;;  %v1299_v16 = vld [vmem:[%s4141_s6 + $0x18] sm:$0xff]  ;;  %v1298_v17 = vld [vmem:[%s4141_s6 + $0x10] sm:$0xff] }
  0x32   : > { %451 = vperm.xlu1 %2845, %v397_v18   ;;  %446 = vperm.xlu0 %2844, %v396_v19  }
  0x36   : > { %590 = vperm.xlu1 %2845, %v536_v20   ;;  %585 = vperm.xlu0 %2844, %v535_v21  }
  0x3a   : > { %461 = vperm.xlu1 %2845, %v399_v22   ;;  %456 = vperm.xlu0 %2844, %v398_v23   ;;  %v1301_v22 = vld [vmem:[%s4141_s6 + $0x28] sm:$0xff] }
  0x3e   : > { %600 = vperm.xlu1 %2845, %v538_v24   ;;  %595 = vperm.xlu0 %2844, %v537_v25   ;;  %v1300_v25 = vld [vmem:[%s4141_s6 + $0x20] sm:$0xff] }
  0x42   : > { %471 = vperm.xlu1 %2845, %v401_v26   ;;  %466 = vperm.xlu0 %2844, %v400_v27  }
  0x46   : > { %610 = vperm.xlu1 %2845, %v540_v28   ;;  %605 = vperm.xlu0 %2844, %v539_v29  }
  0x4a   : > { %481 = vperm.xlu1 %2845, %v403_v30   ;;  %476 = vperm.xlu0 %2844, %v402_v31   ;;  %v1303_v30 = vld [vmem:[%s4141_s6 + $0x38] sm:$0xff] }
  0x4e   : > { %620 = vperm.xlu1 %2845, %v542_v32   ;;  %615 = vperm.xlu0 %2844, %v541_v33  }
  0x52   : > { %758 = vperm.xlu1 %2845, %v720_v34   ;;  %753 = vperm.xlu0 %2844, %v719_v35  }
  0x56   : > { %768 = vperm.xlu1 %2845, %v722_v36   ;;  %763 = vperm.xlu0 %2844, %v721_v37  }
  0x5a   : > { %778 = vperm.xlu1 %2845, %v724_v38   ;;  %773 = vperm.xlu0 %2844, %v723_v39   ;;  %v1302_v39 = vld [vmem:[%s4141_s6 + $0x30] sm:$0xff] }
  0x5e   : > { %788 = vperm.xlu1 %2845, %v726_v41   ;;  %783 = vperm.xlu0 %2844, %v725_v42  }
  0x62   : > { %798 = vperm.xlu1 %2845, %v728_v43   ;;  %793 = vperm.xlu0 %2844, %v727_v44  }
  0x66   : > { %808 = vperm.xlu1 %2845, %v730_v45   ;;  %803 = vperm.xlu0 %2844, %v729_v46  }
  0x6a   : > { %818 = vperm.xlu1 %2845, %v732_v47   ;;  %813 = vperm.xlu0 %2844, %v731_v48  }
  0x6e   : > { %828 = vperm.xlu1 %2845, %v734_v49   ;;  %823 = vperm.xlu0 %2844, %v733_v50   ;;  %v1305_v49 = vld [vmem:[%s4141_s6 + $0x48] sm:$0xff] }
  0x72   : > { %838 = vperm.xlu1 %2845, %v736_v51   ;;  %833 = vperm.xlu0 %2844, %v735_v52  }
  0x76   : > { %848 = vperm.xlu1 %2845, %v738_v53   ;;  %843 = vperm.xlu0 %2844, %v737_v54   ;;  %v1304_v54 = vld [vmem:[%s4141_s6 + $0x40] sm:$0xff] }
  0x7a   : > { %858 = vperm.xlu1 %2845, %v740_v55   ;;  %853 = vperm.xlu0 %2844, %v739_v56  }
  0x7e   : > { %868 = vperm.xlu1 %2845, %v742_v57   ;;  %863 = vperm.xlu0 %2844, %v741_v58  }
  0x82   : > { %878 = vperm.xlu1 %2845, %v744_v59   ;;  %873 = vperm.xlu0 %2844, %v743_v60  }
  0x86   : > { %888 = vperm.xlu1 %2845, %v746_v61   ;;  %883 = vperm.xlu0 %2844, %v745_v62  }
  0x8a   : > { %898 = vperm.xlu1 %2845, %v748_v0   ;;  %893 = vperm.xlu0 %2844, %v747_v1   ;;  %v1307_v0 = vld [vmem:[%s4141_s6 + $0x58] sm:$0xff]  ;;  %v1306_v1 = vld [vmem:[%s4141_s6 + $0x50] sm:$0xff] }
  0x8e   : > { %908 = vperm.xlu1 %2845, %v750_v3   ;;  %903 = vperm.xlu0 %2844, %v749_v4  }
  0x91   : > { %v546_v12 = vpop.permute.xlu1 %545  ;;  %v407_v13 = vpop.permute.xlu0 %406 }
  0x92   : > { %1335 = vperm.xlu1 %2845, %v1297_v10   ;;  %1330 = vperm.xlu0 %2844, %v1296_v11   ;;  %v495_v14 = vmul.f32 %v3357_v8, %v407_v13  ;;  %v496_v15 = vmul.f32 %v3359_v9, %v407_v13 }
  0x94   : > { %v624_v23 = vadd.f32 %v546_v12, %v496_v15  ;;  %v623_v24 = vadd.f32 %v546_v12, %v495_v14 }
  0x95   : > { %v551_v18 = vpop.permute.xlu1 %550  ;;  %v412_v19 = vpop.permute.xlu0 %411 }
  0x96   : > { %v497_v20 = vmul.f32 %v3357_v8, %v412_v19  ;;  %v498_v21 = vmul.f32 %v3359_v9, %v412_v19  ;;  %1345 = vperm.xlu1 %2845, %v1299_v16   ;;  %1340 = vperm.xlu0 %2844, %v1298_v17   ;;  %v656_v31 = vmax.f32 %v624_v23, 0.0  ;;  %v655_v33 = vmax.f32 %v623_v24, 0.0  ;;  %v1309_v16 = vld [vmem:[%s4141_s6 + $0x68] sm:$0xff]  ;;  %v1308_v17 = vld [vmem:[%s4141_s6 + $0x60] sm:$0xff] }
  0x98   : > { %v626_v26 = vadd.f32 %v551_v18, %v498_v21  ;;  %v625_v27 = vadd.f32 %v551_v18, %v497_v20 }
  0x99   : > { %v422_v28 = vpop.permute.xlu1 %421  ;;  %v417_v29 = vpop.permute.xlu0 %416 }
  0x9a   : > { %1355 = vperm.xlu1 %2845, %v1301_v22   ;;  %1350 = vperm.xlu0 %2844, %v1300_v25   ;;  %v658_v32 = vmax.f32 %v626_v26, 0.0  ;;  %v657_v34 = vmax.f32 %v625_v27, 0.0  ;;  %v501_v35 = vmul.f32 %v3357_v8, %v422_v28  ;;  %v502_v36 = vmul.f32 %v3359_v9, %v422_v28  ;;  %v1311_v26 = vld [vmem:[%s4141_s6 + $0x78] sm:$0xff]  ;;  %v1310_v27 = vld [vmem:[%s4141_s6 + $0x70] sm:$0xff] }
  0x9b   : > { %v499_v37 = vmul.f32 %v3357_v8, %v417_v29  ;;  %v500_v38 = vmul.f32 %v3359_v9, %v417_v29 }
  0x9c   : > { %v2610_v43 = vpack.c.bf16 %v658_v32, %v656_v31  ;;  %v2612_v44 = vpack.c.bf16 %v657_v34, %v655_v33 }
  0x9d   : > { %v561_v41 = vpop.permute.xlu1 %560  ;;  %v556_v42 = vpop.permute.xlu0 %555 }
  0x9e   : > { %v629_v45 = vadd.f32 %v561_v41, %v501_v35  ;;  %v630_v46 = vadd.f32 %v561_v41, %v502_v36  ;;  %v627_v47 = vadd.f32 %v556_v42, %v499_v37  ;;  %v628_v48 = vadd.f32 %v556_v42, %v500_v38  ;;  %1365 = vperm.xlu1 %2845, %v1303_v30   ;;  %v1313_v38 = vld [vmem:[%s4141_s6 + $0x88] sm:$0xff] }
  0x9f   : > { %1360 = vperm.xlu0 %2844, %v1302_v39   ;;  %2611 = vmatprep.subr.bf16.mxu0 %v2610_v43  ;;  %v1312_v39 = vld [vmem:[%s4141_s6 + $0x80] sm:$0xff] }
  0xa0   : > { %v661_v50 = vmax.f32 %v629_v45, 0.0  ;;  %v662_v51 = vmax.f32 %v630_v46, 0.0  ;;  %v659_v52 = vmax.f32 %v627_v47, 0.0  ;;  %v660_v53 = vmax.f32 %v628_v48, 0.0  ;;  %2613 = vmatpush1.bf16.msra.mxu0 %v2612_v44 }
  0xa1   : > { %v432_v55 = vpop.permute.xlu1 %431  ;;  %v427_v56 = vpop.permute.xlu0 %426 }
  0xa2   : > { %1375 = vperm.xlu1 %2845, %v1305_v49   ;;  %v2614_v57 = vpack.c.bf16 %v662_v51, %v660_v53  ;;  %v2616_v58 = vpack.c.bf16 %v661_v50, %v659_v52  ;;  %v505_v59 = vmul.f32 %v3357_v8, %v432_v55  ;;  %v506_v60 = vmul.f32 %v3359_v9, %v432_v55  ;;  %v1315_v49 = vld [vmem:[%s4141_s6 + $0x98] sm:$0xff]  ;;  %v1314_v50 = vld [vmem:[%s4141_s6 + $0x90] sm:$0xff] }
  0xa3   : > { %1370 = vperm.xlu0 %2844, %v1304_v54   ;;  %v503_v61 = vmul.f32 %v3357_v8, %v427_v56  ;;  %v504_v62 = vmul.f32 %v3359_v9, %v427_v56 }
  0xa4   : > { %2615 = vmatprep.subr.bf16.mxu0 %v2614_v57 }
  0xa5   : > { %v571_v3 = vpop.permute.xlu1 %570  ;;  %v566_v4 = vpop.permute.xlu0 %565  ;;  %2617 = vmatpush1.bf16.msra.mxu0 %v2616_v58 }
  0xa6   : > { %v633_v6 = vadd.f32 %v571_v3, %v505_v59  ;;  %v634_v7 = vadd.f32 %v571_v3, %v506_v60  ;;  %v631_v10 = vadd.f32 %v566_v4, %v503_v61  ;;  %v632_v11 = vadd.f32 %v566_v4, %v504_v62  ;;  %1385 = vperm.xlu1 %2845, %v1307_v0   ;;  %v1317_v61 = vld [vmem:[%s4141_s6 + $0xa8] sm:$0xff]  ;;  %v1316_v62 = vld [vmem:[%s4141_s6 + $0xa0] sm:$0xff] }
  0xa7   : > { %1380 = vperm.xlu0 %2844, %v1306_v1  }
  0xa8   : > { %v665_v12 = vmax.f32 %v633_v6, 0.0  ;;  %v666_v13 = vmax.f32 %v634_v7, 0.0  ;;  %v663_v14 = vmax.f32 %v631_v10, 0.0  ;;  %v664_v15 = vmax.f32 %v632_v11, 0.0 }
  0xa9   : > { %v442_v18 = vpop.permute.xlu1 %441  ;;  %v437_v19 = vpop.permute.xlu0 %436 }
  0xaa   : > { %1395 = vperm.xlu1 %2845, %v1309_v16   ;;  %v2618_v20 = vpack.c.bf16 %v666_v13, %v664_v15  ;;  %v2620_v21 = vpack.c.bf16 %v665_v12, %v663_v14  ;;  %v509_v22 = vmul.f32 %v3357_v8, %v442_v18  ;;  %v510_v23 = vmul.f32 %v3359_v9, %v442_v18  ;;  %v1319_v12 = vld [vmem:[%s4141_s6 + $0xb8] sm:$0xff]  ;;  %v1318_v13 = vld [vmem:[%s4141_s6 + $0xb0] sm:$0xff] }
  0xab   : > { %1390 = vperm.xlu0 %2844, %v1308_v17   ;;  %v507_v24 = vmul.f32 %v3357_v8, %v437_v19  ;;  %v508_v25 = vmul.f32 %v3359_v9, %v437_v19 }
  0xac   : > { %2619 = vmatprep.subr.bf16.mxu0 %v2618_v20 }
  0xad   : > { %v581_v28 = vpop.permute.xlu1 %580  ;;  %v576_v29 = vpop.permute.xlu0 %575  ;;  %2621 = vmatpush1.bf16.msra.mxu0 %v2620_v21 }
  0xae   : > { %v637_v30 = vadd.f32 %v581_v28, %v509_v22  ;;  %v638_v31 = vadd.f32 %v581_v28, %v510_v23  ;;  %v635_v32 = vadd.f32 %v576_v29, %v507_v24  ;;  %v636_v33 = vadd.f32 %v576_v29, %v508_v25  ;;  %1405 = vperm.xlu1 %2845, %v1311_v26   ;;  %v1321_v24 = vld [vmem:[%s4141_s6 + $0xc8] sm:$0xff]  ;;  %v1320_v25 = vld [vmem:[%s4141_s6 + $0xc0] sm:$0xff] }
  0xaf   : > { %1400 = vperm.xlu0 %2844, %v1310_v27  }
  0xb0   : > { %v669_v34 = vmax.f32 %v637_v30, 0.0  ;;  %v670_v35 = vmax.f32 %v638_v31, 0.0  ;;  %v667_v36 = vmax.f32 %v635_v32, 0.0  ;;  %v668_v37 = vmax.f32 %v636_v33, 0.0 }
  0xb1   : > { %v452_v41 = vpop.permute.xlu1 %451  ;;  %v447_v42 = vpop.permute.xlu0 %446 }
  0xb2   : > { %1415 = vperm.xlu1 %2845, %v1313_v38   ;;  %v2622_v43 = vpack.c.bf16 %v670_v35, %v668_v37  ;;  %v2624_v44 = vpack.c.bf16 %v669_v34, %v667_v36  ;;  %v513_v45 = vmul.f32 %v3357_v8, %v452_v41  ;;  %v514_v46 = vmul.f32 %v3359_v9, %v452_v41  ;;  %v1323_v34 = vld [vmem:[%s4141_s6 + $0xd8] sm:$0xff]  ;;  %v1322_v35 = vld [vmem:[%s4141_s6 + $0xd0] sm:$0xff] }
  0xb3   : > { %1410 = vperm.xlu0 %2844, %v1312_v39   ;;  %v511_v47 = vmul.f32 %v3357_v8, %v447_v42  ;;  %v512_v48 = vmul.f32 %v3359_v9, %v447_v42 }
  0xb4   : > { %2623 = vmatprep.subr.bf16.mxu0 %v2622_v43 }
  0xb5   : > { %v591_v51 = vpop.permute.xlu1 %590  ;;  %v586_v52 = vpop.permute.xlu0 %585  ;;  %2625 = vmatpush1.bf16.msra.mxu0 %v2624_v44 }
  0xb6   : > { %v641_v53 = vadd.f32 %v591_v51, %v513_v45  ;;  %v642_v54 = vadd.f32 %v591_v51, %v514_v46  ;;  %v639_v55 = vadd.f32 %v586_v52, %v511_v47  ;;  %v640_v56 = vadd.f32 %v586_v52, %v512_v48  ;;  %1425 = vperm.xlu1 %2845, %v1315_v49   ;;  %v1325_v47 = vld [vmem:[%s4141_s6 + $0xe8] sm:$0xff]  ;;  %v1324_v48 = vld [vmem:[%s4141_s6 + $0xe0] sm:$0xff] }
  0xb7   : > { %1420 = vperm.xlu0 %2844, %v1314_v50  }
  0xb8   : > { %v673_v57 = vmax.f32 %v641_v53, 0.0  ;;  %v674_v58 = vmax.f32 %v642_v54, 0.0  ;;  %v671_v59 = vmax.f32 %v639_v55, 0.0  ;;  %v672_v60 = vmax.f32 %v640_v56, 0.0 }
  0xb9   : > { %v462_v0 = vpop.permute.xlu1 %461  ;;  %v457_v1 = vpop.permute.xlu0 %456 }
  0xba   : > { %1435 = vperm.xlu1 %2845, %v1317_v61   ;;  %v2626_v3 = vpack.c.bf16 %v674_v58, %v672_v60  ;;  %v2628_v4 = vpack.c.bf16 %v673_v57, %v671_v59  ;;  %v517_v6 = vmul.f32 %v3357_v8, %v462_v0  ;;  %v518_v7 = vmul.f32 %v3359_v9, %v462_v0  ;;  %v1327_v57 = vld [vmem:[%s4141_s6 + $0xf8] sm:$0xff]  ;;  %v1326_v58 = vld [vmem:[%s4141_s6 + $0xf0] sm:$0xff] }
  0xbb   : > { %1430 = vperm.xlu0 %2844, %v1316_v62   ;;  %v515_v10 = vmul.f32 %v3357_v8, %v457_v1  ;;  %v516_v11 = vmul.f32 %v3359_v9, %v457_v1 }
  0xbc   : > { %2627 = vmatprep.subr.bf16.mxu0 %v2626_v3 }
  0xbd   : > { %v601_v14 = vpop.permute.xlu1 %600  ;;  %v596_v15 = vpop.permute.xlu0 %595  ;;  %2629 = vmatpush1.bf16.msra.mxu0 %v2628_v4 }
  0xbe   : > { %v645_v16 = vadd.f32 %v601_v14, %v517_v6  ;;  %v646_v17 = vadd.f32 %v601_v14, %v518_v7  ;;  %v643_v18 = vadd.f32 %v596_v15, %v515_v10  ;;  %v644_v19 = vadd.f32 %v596_v15, %v516_v11  ;;  %1445 = vperm.xlu1 %2845, %v1319_v12   ;;  %v1842_v6 = vld [vmem:[%s4143_s8 + $0x8] sm:$0xff]  ;;  %v1841_v7 = vld [vmem:[%s4143_s8] sm:$0xff]  ;;  %v1844_v12 = vld [vmem:[%s4143_s8 + $0x18] sm:$0xff] }
  0xbf   : > { %1440 = vperm.xlu0 %2844, %v1318_v13   ;;  %v1843_v13 = vld [vmem:[%s4143_s8 + $0x10] sm:$0xff]  ;;  %v687_v14 = vld [vmem:[%s4138_s3] sm:$0xff]  ;;  %v1846_v15 = vld [vmem:[%s4143_s8 + $0x28] sm:$0xff] }
  0xc0   : > { %v677_v20 = vmax.f32 %v645_v16, 0.0  ;;  %v678_v21 = vmax.f32 %v646_v17, 0.0  ;;  %v675_v22 = vmax.f32 %v643_v18, 0.0  ;;  %v676_v23 = vmax.f32 %v644_v19, 0.0  ;;  %v1845_v16 = vld [vmem:[%s4143_s8 + $0x20] sm:$0xff]  ;;  %v688_v17 = vld [vmem:[%s4138_s3 + $0x8] sm:$0xff] }
  0xc1   : > { %v472_v26 = vpop.permute.xlu1 %471  ;;  %v467_v27 = vpop.permute.xlu0 %466  ;;  %v1848_v18 = vld [vmem:[%s4143_s8 + $0x38] sm:$0xff]  ;;  %v1847_v19 = vld [vmem:[%s4143_s8 + $0x30] sm:$0xff] }
  0xc2   : > { %1455 = vperm.xlu1 %2845, %v1321_v24   ;;  %v2630_v28 = vpack.c.bf16 %v678_v21, %v676_v23  ;;  %v2632_v29 = vpack.c.bf16 %v677_v20, %v675_v22  ;;  %v521_v30 = vmul.f32 %v3357_v8, %v472_v26  ;;  %v522_v31 = vmul.f32 %v3359_v9, %v472_v26  ;;  %v689_v20 = vld [vmem:[%s4138_s3 + $0x10] sm:$0xff]  ;;  %v1850_v21 = vld [vmem:[%s4143_s8 + $0x48] sm:$0xff]  ;;  %v1849_v22 = vld [vmem:[%s4143_s8 + $0x40] sm:$0xff] }
  0xc3   : > { %1450 = vperm.xlu0 %2844, %v1320_v25   ;;  %v519_v32 = vmul.f32 %v3357_v8, %v467_v27  ;;  %v520_v33 = vmul.f32 %v3359_v9, %v467_v27  ;;  %v690_v23 = vld [vmem:[%s4138_s3 + $0x18] sm:$0xff]  ;;  %v1851_v25 = vld [vmem:[%s4143_s8 + $0x50] sm:$0xff]  ;;  %v691_v26 = vld [vmem:[%s4138_s3 + $0x20] sm:$0xff] }
  0xc4   : > { %2631 = vmatprep.subr.bf16.mxu0 %v2630_v28  ;;  %v1852_v24 = vld [vmem:[%s4143_s8 + $0x58] sm:$0xff]  ;;  %v1854_v27 = vld [vmem:[%s4143_s8 + $0x68] sm:$0xff]  ;;  %v1853_v28 = vld [vmem:[%s4143_s8 + $0x60] sm:$0xff] }
  0xc5   : > { %v611_v36 = vpop.permute.xlu1 %610  ;;  %v606_v37 = vpop.permute.xlu0 %605  ;;  %2633 = vmatpush1.bf16.msra.mxu0 %v2632_v29  ;;  %v692_v29 = vld [vmem:[%s4138_s3 + $0x28] sm:$0xff] }
  0xc6   : > { %v649_v38 = vadd.f32 %v611_v36, %v521_v30  ;;  %v650_v39 = vadd.f32 %v611_v36, %v522_v31  ;;  %v647_v41 = vadd.f32 %v606_v37, %v519_v32  ;;  %v648_v42 = vadd.f32 %v606_v37, %v520_v33  ;;  %1465 = vperm.xlu1 %2845, %v1323_v34   ;;  %v1856_v30 = vld [vmem:[%s4143_s8 + $0x78] sm:$0xff]  ;;  %v1855_v31 = vld [vmem:[%s4143_s8 + $0x70] sm:$0xff]  ;;  %v2291_v33 = vld [vmem:[%s4144_s9 + $0x8] sm:$0xff] }
  0xc7   : > { %1460 = vperm.xlu0 %2844, %v1322_v35   ;;  %v693_v32 = vld [vmem:[%s4138_s3 + $0x30] sm:$0xff]  ;;  %v2290_v34 = vld [vmem:[%s4144_s9] sm:$0xff]  ;;  %v694_v35 = vld [vmem:[%s4138_s3 + $0x38] sm:$0xff] }
  0xc8   : > { %v681_v43 = vmax.f32 %v649_v38, 0.0  ;;  %v682_v44 = vmax.f32 %v650_v39, 0.0  ;;  %v679_v45 = vmax.f32 %v647_v41, 0.0  ;;  %v680_v46 = vmax.f32 %v648_v42, 0.0  ;;  %v2293_v36 = vld [vmem:[%s4144_s9 + $0x18] sm:$0xff]  ;;  %v2292_v37 = vld [vmem:[%s4144_s9 + $0x10] sm:$0xff] }
  0xc9   : > { %v482_v49 = vpop.permute.xlu1 %481  ;;  %v477_v50 = vpop.permute.xlu0 %476  ;;  %v695_v38 = vld [vmem:[%s4138_s3 + $0x40] sm:$0xff]  ;;  %v2295_v39 = vld [vmem:[%s4144_s9 + $0x28] sm:$0xff] }
  0xca   : > { %1475 = vperm.xlu1 %2845, %v1325_v47   ;;  %v2634_v51 = vpack.c.bf16 %v682_v44, %v680_v46  ;;  %v2636_v52 = vpack.c.bf16 %v681_v43, %v679_v45  ;;  %v525_v53 = vmul.f32 %v3357_v8, %v482_v49  ;;  %v526_v54 = vmul.f32 %v3359_v9, %v482_v49  ;;  %v2294_v41 = vld [vmem:[%s4144_s9 + $0x20] sm:$0xff]  ;;  %v696_v42 = vld [vmem:[%s4138_s3 + $0x48] sm:$0xff]  ;;  %v2297_v43 = vld [vmem:[%s4144_s9 + $0x38] sm:$0xff] }
  0xcb   : > { %1470 = vperm.xlu0 %2844, %v1324_v48   ;;  %v523_v55 = vmul.f32 %v3357_v8, %v477_v50  ;;  %v524_v56 = vmul.f32 %v3359_v9, %v477_v50  ;;  %v2296_v44 = vld [vmem:[%s4144_s9 + $0x30] sm:$0xff]  ;;  %v2299_v46 = vld [vmem:[%s4144_s9 + $0x48] sm:$0xff]  ;;  %v2298_v47 = vld [vmem:[%s4144_s9 + $0x40] sm:$0xff] }
  0xcc   : > { %2635 = vmatprep.subr.bf16.mxu0 %v2634_v51  ;;  %v697_v45 = vld [vmem:[%s4138_s3 + $0x50] sm:$0xff]  ;;  %v698_v48 = vld [vmem:[%s4138_s3 + $0x58] sm:$0xff]  ;;  %v699_v51 = vld [vmem:[%s4138_s3 + $0x60] sm:$0xff] }
  0xcd   : > { %v621_v59 = vpop.permute.xlu1 %620  ;;  %v616_v60 = vpop.permute.xlu0 %615  ;;  %2637 = vmatpush1.bf16.msra.mxu0 %v2636_v52  ;;  %v2301_v49 = vld [vmem:[%s4144_s9 + $0x58] sm:$0xff]  ;;  %v2300_v50 = vld [vmem:[%s4144_s9 + $0x50] sm:$0xff]  ;;  %v2303_v52 = vld [vmem:[%s4144_s9 + $0x68] sm:$0xff] }
  0xce   : > { %v653_v61 = vadd.f32 %v621_v59, %v525_v53  ;;  %v654_v62 = vadd.f32 %v621_v59, %v526_v54  ;;  %v651_v0 = vadd.f32 %v616_v60, %v523_v55  ;;  %v652_v1 = vadd.f32 %v616_v60, %v524_v56  ;;  %1485 = vperm.xlu1 %2845, %v1327_v57   ;;  %v2302_v53 = vld [vmem:[%s4144_s9 + $0x60] sm:$0xff]  ;;  %v700_v54 = vld [vmem:[%s4138_s3 + $0x68] sm:$0xff]  ;;  %v2305_v55 = vld [vmem:[%s4144_s9 + $0x78] sm:$0xff] }
  0xcf   : > { %1480 = vperm.xlu0 %2844, %v1326_v58   ;;  %v2304_v56 = vld [vmem:[%s4144_s9 + $0x70] sm:$0xff]  ;;  %v2460_v58 = vld [vmem:[#allocation2] sm:$0x1]  ;;  %v702_v59 = vld [vmem:[%s4138_s3 + $0x78] sm:$0xff] }
  0xd0   : > { %v685_v8 = vmax.f32 %v653_v61, 0.0  ;;  %v686_v9 = vmax.f32 %v654_v62, 0.0  ;;  %v683_v3 = vmax.f32 %v651_v0, 0.0  ;;  %v684_v4 = vmax.f32 %v652_v1, 0.0  ;;  %v701_v57 = vld [vmem:[%s4138_s3 + $0x70] sm:$0xff]  ;;  %v703_v60 = vld [vmem:[%s4138_s3 + $0x80] sm:$0xff] }
  0xd1   : > { %v704_v61 = vld [vmem:[%s4138_s3 + $0x88] sm:$0xff]  ;;  %v705_v62 = vld [vmem:[%s4138_s3 + $0x90] sm:$0xff]  ;;  %v706_v0 = vld [vmem:[%s4138_s3 + $0x98] sm:$0xff] }
  0xd2   : > { %v2638_v10 = vpack.c.bf16 %v686_v9, %v684_v4  ;;  %v2640_v11 = vpack.c.bf16 %v685_v8, %v683_v3  ;;  %1864 = vperm.xlu1 %2845, %v1842_v6   ;;  %v707_v1 = vld [vmem:[%s4138_s3 + $0xa0] sm:$0xff]  ;;  %v708_v8 = vld [vmem:[%s4138_s3 + $0xa8] sm:$0xff]  ;;  %v709_v9 = vld [vmem:[%s4138_s3 + $0xb0] sm:$0xff] }
  0xd3   : > { %1859 = vperm.xlu0 %2844, %v1841_v7   ;;  %v710_v3 = vld [vmem:[%s4138_s3 + $0xb8] sm:$0xff]  ;;  %v711_v4 = vld [vmem:[%s4138_s3 + $0xc0] sm:$0xff]  ;;  %v712_v6 = vld [vmem:[%s4138_s3 + $0xc8] sm:$0xff] }
  0xd4   : > { %2639 = vmatprep.subr.bf16.mxu0 %v2638_v10  ;;  %v713_v7 = vld [vmem:[%s4138_s3 + $0xd0] sm:$0xff]  ;;  %v714_v10 = vld [vmem:[%s4138_s3 + $0xd8] sm:$0xff] }
  0xd5   : > { %2641 = vmatpush1.bf16.msra.mxu0 %v2640_v11  ;;  %v715_v11 = vld [vmem:[%s4138_s3 + $0xe0] sm:$0xff] }
  0xd6   : > { %1874 = vperm.xlu1 %2845, %v1844_v12   ;;  %v716_v12 = vld [vmem:[%s4138_s3 + $0xe8] sm:$0xff] }
  0xd7   : > { %1869 = vperm.xlu0 %2844, %v1843_v13   ;;  %v717_v13 = vld [vmem:[%s4138_s3 + $0xf0] sm:$0xff] }
  0xd8   : > { %976 = vmatmul.mubr.f32.vlgmr.msra.gmra.mrb[0].mxu0 %v687_v14  ;;  %v718_v14 = vld [vmem:[%s4138_s3 + $0xf8] sm:$0xff] }
  0xd9   : > { %981 = vmatprep.mubr.f32.mxu0 %v3039_v40 }
  0xda   : > { %1884 = vperm.xlu1 %2845, %v1846_v15  }
  0xdb   : > { %1879 = vperm.xlu0 %2844, %v1845_v16  }
  0xdc   : > { %982 = vmatmul.mubr.f32.gmra.mrb[2].mxu0 %v688_v17  ;;  %v754_v17 = vpop.permute.xlu0 %753 }
  0xdd   : > { %987 = vmatprep.mubr.f32.mxu0 %v3039_v40 }
  0xde   : > { %1894 = vperm.xlu1 %2845, %v1848_v18  }
  0xdf   : > { %1889 = vperm.xlu0 %2844, %v1847_v19   ;;  %v759_v19 = vpop.permute.xlu1 %758 }
  0xe0   : > { %988 = vmatmul.mubr.f32.gmra.mrb[4].mxu0 %v689_v20 }
  0xe1   : > { %993 = vmatprep.mubr.f32.mxu0 %v3039_v40 }
  0xe2   : > { %1904 = vperm.xlu1 %2845, %v1850_v21  }
  0xe3   : > { %1899 = vperm.xlu0 %2844, %v1849_v22  }
  0xe4   : > { %994 = vmatmul.mubr.f32.gmra.mrb[6].mxu0 %v690_v23 }
  0xe5   : > { %999 = vmatprep.mubr.f32.mxu0 %v3039_v40 }
  0xe6   : > { %1914 = vperm.xlu1 %2845, %v1852_v24   ;;  %v1233_v24 = vld [vmem:[%s4140_s5 + $0x8] sm:$0xff] }
  0xe7   : > { %1909 = vperm.xlu0 %2844, %v1851_v25   ;;  %1552 = vmatprep.mubr.f32.mxu1 %v1233_v24 }
  0xe8   : > { %1000 = vmatmul.mubr.f32.gmra.mrb[8].mxu0 %v691_v26 }
  0xe9   : > { %1005 = vmatprep.mubr.f32.mxu0 %v3039_v40 }
  0xea   : > { %1924 = vperm.xlu1 %2845, %v1854_v27  }
  0xeb   : > { %1919 = vperm.xlu0 %2844, %v1853_v28  }
  0xec   : > { %1006 = vmatmul.mubr.f32.gmra.mrb[10].mxu0 %v692_v29 }
  0xed   : > { %1011 = vmatprep.mubr.f32.mxu0 %v3039_v40 }
  0xee   : > { %1934 = vperm.xlu1 %2845, %v1856_v30  }
  0xef   : > { %1929 = vperm.xlu0 %2844, %v1855_v31  }
  0xf0   : > { %1012 = vmatmul.mubr.f32.gmra.mrb[12].mxu0 %v693_v32  ;;  %v764_v32 = vpop.permute.xlu0 %763 }
  0xf1   : > { %1017 = vmatprep.mubr.f32.mxu0 %v3039_v40 }
  0xf2   : > { %2313 = vperm.xlu1 %2845, %v2291_v33  }
  0xf3   : > { %2308 = vperm.xlu0 %2844, %v2290_v34  }
  0xf4   : > { %1018 = vmatmul.mubr.f32.gmra.mrb[14].mxu0 %v694_v35  ;;  %v769_v35 = vpop.permute.xlu1 %768 }
  0xf5   : > { %1023 = vmatprep.mubr.f32.mxu0 %v3039_v40 }
  0xf6   : > { %2323 = vperm.xlu1 %2845, %v2293_v36  }
  0xf7   : > { %2318 = vperm.xlu0 %2844, %v2292_v37  }
  0xf8   : > { %1024 = vmatmul.mubr.f32.gmra.mrb[16].mxu0 %v695_v38 }
  0xf9   : > { %1029 = vmatprep.mubr.f32.mxu0 %v3039_v40 }
  0xfa   : > { %2333 = vperm.xlu1 %2845, %v2295_v39  }
  0xfb   : > { %2328 = vperm.xlu0 %2844, %v2294_v41  }
  0xfc   : > { %1030 = vmatmul.mubr.f32.gmra.mrb[18].mxu0 %v696_v42 }
  0xfd   : > { %1035 = vmatprep.mubr.f32.mxu0 %v3039_v40 }
  0xfe   : > { %2343 = vperm.xlu1 %2845, %v2297_v43  }
  0xff   : > { %2338 = vperm.xlu0 %2844, %v2296_v44  }
 0x100   : > { %1036 = vmatmul.mubr.f32.gmra.mrb[20].mxu0 %v697_v45 }
 0x101   : > { %1041 = vmatprep.mubr.f32.mxu0 %v3039_v40 }
 0x102   : > { %2353 = vperm.xlu1 %2845, %v2299_v46  }
 0x103   : > { %2348 = vperm.xlu0 %2844, %v2298_v47  }
 0x104   : > { %1042 = vmatmul.mubr.f32.gmra.mrb[22].mxu0 %v698_v48 }
 0x105   : > { %1047 = vmatprep.mubr.f32.mxu0 %v3039_v40 }
 0x106   : > { %2363 = vperm.xlu1 %2845, %v2301_v49   ;;  %v774_v49 = vpop.permute.xlu0 %773 }
 0x107   : > { %2358 = vperm.xlu0 %2844, %v2300_v50  }
 0x108   : > { %1048 = vmatmul.mubr.f32.gmra.mrb[24].mxu0 %v699_v51 }
 0x109   : > { %1053 = vmatprep.mubr.f32.mxu0 %v3039_v40 }
 0x10a   : > { %2373 = vperm.xlu1 %2845, %v2303_v52   ;;  %v779_v52 = vpop.permute.xlu1 %778 }
 0x10b   : > { %2368 = vperm.xlu0 %2844, %v2302_v53  }
 0x10c   : > { %1054 = vmatmul.mubr.f32.gmra.mrb[26].mxu0 %v700_v54 }
 0x10d   : > { %1059 = vmatprep.mubr.f32.mxu0 %v3039_v40 }
 0x10e   : > { %2383 = vperm.xlu1 %2845, %v2305_v55  }
 0x10f   : > { %2378 = vperm.xlu0 %2844, %v2304_v56  }
 0x110   : > { %1060 = vmatmul.mubr.f32.gmra.mrb[28].mxu0 %v701_v57 }
 0x111   : > { %1065 = vmatprep.mubr.f32.mxu0 %v3039_v40 }
 0x113   : > { %2463 = vperm.xlu0 %2844, %v2460_v58  }
 0x114   : > { %1066 = vmatmul.mubr.f32.gmra.mrb[30].mxu0 %v702_v59 }
 0x115   : > { %1071 = vmatprep.mubr.f32.mxu0 %v3039_v40 }
 0x118   : > { %1072 = vmatmul.mubr.f32.gmra.mrb[32].mxu0 %v703_v60 }
 0x119   : > { %1077 = vmatprep.mubr.f32.mxu0 %v3039_v40 }
 0x11c   : > { %1078 = vmatmul.mubr.f32.gmra.mrb[34].mxu0 %v704_v61 }
 0x11d   : > { %1083 = vmatprep.mubr.f32.mxu0 %v3039_v40 }
 0x120   : > { %1084 = vmatmul.mubr.f32.gmra.mrb[36].mxu0 %v705_v62 }
 0x121   : > { %1089 = vmatprep.mubr.f32.mxu0 %v3039_v40 }
 0x124   : > { %1090 = vmatmul.mubr.f32.gmra.mrb[38].mxu0 %v706_v0 }
 0x125   : > { %1095 = vmatprep.mubr.f32.mxu0 %v3039_v40 }
 0x128   : > { %1096 = vmatmul.mubr.f32.gmra.mrb[40].mxu0 %v707_v1 }
 0x129   : > { %1101 = vmatprep.mubr.f32.mxu0 %v3039_v40 }
 0x12c   : > { %1102 = vmatmul.mubr.f32.gmra.mrb[42].mxu0 %v708_v8  ;;  %v784_v8 = vpop.permute.xlu0 %783 }
 0x12d   : > { %1107 = vmatprep.mubr.f32.mxu0 %v3039_v40 }
 0x130   : > { %1108 = vmatmul.mubr.f32.gmra.mrb[44].mxu0 %v709_v9 }
 0x131   : > { %1113 = vmatprep.mubr.f32.mxu0 %v3039_v40 }
 0x134   : > { %1114 = vmatmul.mubr.f32.gmra.mrb[46].mxu0 %v710_v3 }
 0x135   : > { %1119 = vmatprep.mubr.f32.mxu0 %v3039_v40 }
 0x138   : > { %1120 = vmatmul.mubr.f32.gmra.mrb[48].mxu0 %v711_v4  ;;  %v789_v4 = vpop.permute.xlu1 %788 }
 0x139   : > { %1125 = vmatprep.mubr.f32.mxu0 %v3039_v40 }
 0x13c   : > { %1126 = vmatmul.mubr.f32.gmra.mrb[50].mxu0 %v712_v6 }
 0x13d   : > { %1131 = vmatprep.mubr.f32.mxu0 %v3039_v40 }
 0x140   : > { %1132 = vmatmul.mubr.f32.gmra.mrb[52].mxu0 %v713_v7 }
 0x141   : > { %1137 = vmatprep.mubr.f32.mxu0 %v3039_v40 }
 0x144   : > { %1138 = vmatmul.mubr.f32.gmra.mrb[54].mxu0 %v714_v10 }
 0x145   : > { %1143 = vmatprep.mubr.f32.mxu0 %v3039_v40 }
 0x148   : > { %1144 = vmatmul.mubr.f32.gmra.mrb[56].mxu0 %v715_v11 }
 0x149   : > { %1149 = vmatprep.mubr.f32.mxu0 %v3039_v40 }
 0x14c   : > { %1150 = vmatmul.mubr.f32.gmra.mrb[58].mxu0 %v716_v12 }
 0x14d   : > { %1155 = vmatprep.mubr.f32.mxu0 %v3039_v40 }
 0x150   : > { %1156 = vmatmul.mubr.f32.gmra.mrb[60].mxu0 %v717_v13 }
 0x151   : > { %1161 = vmatprep.mubr.f32.mxu0 %v3039_v40 }
 0x154   : > { %1162 = vmatmul.mubr.f32.gmra.mrb[62].mxu0 %v718_v14 }
 0x1ab   : > { %v977_v15 = vpop.f32.mrb[0].mxu0 }
 0x1ac   : > { %v979_v16 = vpop.f32.mrb[1].mxu0  ;;  %v978_v18 = vadd.f32 %v977_v15, %v754_v17 }
 0x1ad   : > { %v980_v20 = vadd.f32 %v979_v16, %v754_v17 }
 0x1ae   : > { %v1168_v40 = vmax.f32 %v978_v18, 0.0 }
 0x1af   : > { %v983_v21 = vpop.f32.mrb[2].mxu0  ;;  %v1169_v27 = vmax.f32 %v980_v20, 0.0  ;;  %v794_v20 = vpop.permute.xlu0 %793 }
 0x1b0   : > { %v984_v22 = vadd.f32 %v983_v21, %v759_v19  ;;  %v985_v23 = vpop.f32.mrb[3].mxu0 }
 0x1b1   : > { %v986_v25 = vadd.f32 %v985_v23, %v759_v19  ;;  %v799_v23 = vpop.permute.xlu1 %798 }
 0x1b2   : > { %v1170_v26 = vmax.f32 %v984_v22, 0.0 }
 0x1b3   : > { %v1171_v28 = vmax.f32 %v986_v25, 0.0  ;;  %v989_v29 = vpop.f32.mrb[4].mxu0 }
 0x1b4   : > { %v991_v30 = vpop.f32.mrb[5].mxu0  ;;  %v2644_v31 = vpack.c.bf16 %v1170_v26, %v1168_v40  ;;  %v990_v34 = vadd.f32 %v989_v29, %v764_v32 }
 0x1b5   : > { %v2642_v33 = vpack.c.bf16 %v1171_v28, %v1169_v27  ;;  %v992_v36 = vadd.f32 %v991_v30, %v764_v32 }
 0x1b6   : > { %v1172_v42 = vmax.f32 %v990_v34, 0.0 }
 0x1b7   : > { %v995_v37 = vpop.f32.mrb[6].mxu0  ;;  %2643 = vmatprep.subr.bf16.mxu1 %v2642_v33  ;;  %v1173_v44 = vmax.f32 %v992_v36, 0.0 }
 0x1b8   : > { %v996_v38 = vadd.f32 %v995_v37, %v769_v35  ;;  %v997_v39 = vpop.f32.mrb[7].mxu0  ;;  %2645 = vmatpush1.bf16.msra.mxu1 %v2644_v31 }
 0x1b9   : > { %v998_v41 = vadd.f32 %v997_v39, %v769_v35  ;;  %v804_v35 = vpop.permute.xlu0 %803 }
 0x1ba   : > { %v1174_v43 = vmax.f32 %v996_v38, 0.0  ;;  %v809_v38 = vpop.permute.xlu1 %808 }
 0x1bb   : > { %v1175_v45 = vmax.f32 %v998_v41, 0.0  ;;  %v1001_v46 = vpop.f32.mrb[8].mxu0 }
 0x1bc   : > { %v2648_v47 = vpack.c.bf16 %v1174_v43, %v1172_v42  ;;  %v1003_v48 = vpop.f32.mrb[9].mxu0  ;;  %v1002_v51 = vadd.f32 %v1001_v46, %v774_v49 }
 0x1bd   : > { %v2646_v50 = vpack.c.bf16 %v1175_v45, %v1173_v44  ;;  %v1004_v53 = vadd.f32 %v1003_v48, %v774_v49 }
 0x1be   : > { %v1176_v58 = vmax.f32 %v1002_v51, 0.0 }
 0x1bf   : > { %v1007_v54 = vpop.f32.mrb[10].mxu0  ;;  %2647 = vmatprep.subr.bf16.mxu1 %v2646_v50  ;;  %v1177_v60 = vmax.f32 %v1004_v53, 0.0 }
 0x1c0   : > { %v1008_v55 = vadd.f32 %v1007_v54, %v779_v52  ;;  %v1009_v56 = vpop.f32.mrb[11].mxu0  ;;  %2649 = vmatpush1.bf16.msra.mxu1 %v2648_v47 }
 0x1c1   : > { %v1010_v57 = vadd.f32 %v1009_v56, %v779_v52  ;;  %v814_v52 = vpop.permute.xlu0 %813 }
 0x1c2   : > { %v1178_v59 = vmax.f32 %v1008_v55, 0.0  ;;  %v819_v55 = vpop.permute.xlu1 %818 }
 0x1c3   : > { %v1179_v61 = vmax.f32 %v1010_v57, 0.0  ;;  %v1013_v62 = vpop.f32.mrb[12].mxu0 }
 0x1c4   : > { %v2652_v0 = vpack.c.bf16 %v1178_v59, %v1176_v58  ;;  %v1015_v1 = vpop.f32.mrb[13].mxu0  ;;  %v1014_v3 = vadd.f32 %v1013_v62, %v784_v8 }
 0x1c5   : > { %v2650_v9 = vpack.c.bf16 %v1179_v61, %v1177_v60  ;;  %v1016_v6 = vadd.f32 %v1015_v1, %v784_v8 }
 0x1c6   : > { %v1180_v13 = vmax.f32 %v1014_v3, 0.0 }
 0x1c7   : > { %v1019_v7 = vpop.f32.mrb[14].mxu0  ;;  %2651 = vmatprep.subr.bf16.mxu1 %v2650_v9  ;;  %v1181_v15 = vmax.f32 %v1016_v6, 0.0 }
 0x1c8   : > { %v1020_v10 = vadd.f32 %v1019_v7, %v789_v4  ;;  %v1021_v11 = vpop.f32.mrb[15].mxu0  ;;  %2653 = vmatpush1.bf16.msra.mxu1 %v2652_v0 }
 0x1c9   : > { %v1022_v12 = vadd.f32 %v1021_v11, %v789_v4  ;;  %v824_v4 = vpop.permute.xlu0 %823 }
 0x1ca   : > { %v1182_v14 = vmax.f32 %v1020_v10, 0.0  ;;  %v829_v10 = vpop.permute.xlu1 %828 }
 0x1cb   : > { %v1183_v16 = vmax.f32 %v1022_v12, 0.0  ;;  %v1025_v17 = vpop.f32.mrb[16].mxu0 }
 0x1cc   : > { %v2656_v18 = vpack.c.bf16 %v1182_v14, %v1180_v13  ;;  %v1027_v19 = vpop.f32.mrb[17].mxu0  ;;  %v1026_v22 = vadd.f32 %v1025_v17, %v794_v20 }
 0x1cd   : > { %v2654_v21 = vpack.c.bf16 %v1183_v16, %v1181_v15  ;;  %v1028_v24 = vadd.f32 %v1027_v19, %v794_v20 }
 0x1ce   : > { %v1184_v28 = vmax.f32 %v1026_v22, 0.0 }
 0x1cf   : > { %v1031_v25 = vpop.f32.mrb[18].mxu0  ;;  %2655 = vmatprep.subr.bf16.mxu1 %v2654_v21  ;;  %v1185_v30 = vmax.f32 %v1028_v24, 0.0 }
 0x1d0   : > { %v1032_v40 = vadd.f32 %v1031_v25, %v799_v23  ;;  %v1033_v26 = vpop.f32.mrb[19].mxu0  ;;  %2657 = vmatpush1.bf16.msra.mxu1 %v2656_v18 }
 0x1d1   : > { %v1034_v27 = vadd.f32 %v1033_v26, %v799_v23  ;;  %v834_v23 = vpop.permute.xlu0 %833 }
 0x1d2   : > { %v1186_v29 = vmax.f32 %v1032_v40, 0.0  ;;  %v839_v40 = vpop.permute.xlu1 %838 }
 0x1d3   : > { %v1187_v31 = vmax.f32 %v1034_v27, 0.0  ;;  %v1037_v32 = vpop.f32.mrb[20].mxu0 }
 0x1d4   : > { %v2660_v33 = vpack.c.bf16 %v1186_v29, %v1184_v28  ;;  %v1039_v34 = vpop.f32.mrb[21].mxu0  ;;  %v1038_v37 = vadd.f32 %v1037_v32, %v804_v35 }
 0x1d5   : > { %v2658_v36 = vpack.c.bf16 %v1187_v31, %v1185_v30  ;;  %v1040_v39 = vadd.f32 %v1039_v34, %v804_v35 }
 0x1d6   : > { %v1188_v45 = vmax.f32 %v1038_v37, 0.0 }
 0x1d7   : > { %v1043_v41 = vpop.f32.mrb[22].mxu0  ;;  %2659 = vmatprep.subr.bf16.mxu1 %v2658_v36  ;;  %v1189_v47 = vmax.f32 %v1040_v39, 0.0 }
 0x1d8   : > { %v1044_v42 = vadd.f32 %v1043_v41, %v809_v38  ;;  %v1045_v43 = vpop.f32.mrb[23].mxu0  ;;  %2661 = vmatpush1.bf16.msra.mxu1 %v2660_v33 }
 0x1d9   : > { %v1046_v44 = vadd.f32 %v1045_v43, %v809_v38  ;;  %v844_v38 = vpop.permute.xlu0 %843 }
 0x1da   : > { %v1190_v46 = vmax.f32 %v1044_v42, 0.0  ;;  %v849_v42 = vpop.permute.xlu1 %848 }
 0x1db   : > { %v1191_v48 = vmax.f32 %v1046_v44, 0.0  ;;  %v1049_v49 = vpop.f32.mrb[24].mxu0 }
 0x1dc   : > { %v2664_v50 = vpack.c.bf16 %v1190_v46, %v1188_v45  ;;  %v1051_v51 = vpop.f32.mrb[25].mxu0  ;;  %v1050_v54 = vadd.f32 %v1049_v49, %v814_v52 }
 0x1dd   : > { %v2662_v53 = vpack.c.bf16 %v1191_v48, %v1189_v47  ;;  %v1052_v56 = vadd.f32 %v1051_v51, %v814_v52 }
 0x1de   : > { %v1192_v61 = vmax.f32 %v1050_v54, 0.0 }
 0x1df   : > { %v1055_v57 = vpop.f32.mrb[26].mxu0  ;;  %2663 = vmatprep.subr.bf16.mxu1 %v2662_v53  ;;  %v1193_v0 = vmax.f32 %v1052_v56, 0.0 }
 0x1e0   : > { %v1056_v58 = vadd.f32 %v1055_v57, %v819_v55  ;;  %v1057_v59 = vpop.f32.mrb[27].mxu0  ;;  %2665 = vmatpush1.bf16.msra.mxu1 %v2664_v50 }
 0x1e1   : > { %v1058_v60 = vadd.f32 %v1057_v59, %v819_v55  ;;  %v854_v55 = vpop.permute.xlu0 %853 }
 0x1e2   : > { %v1194_v62 = vmax.f32 %v1056_v58, 0.0  ;;  %v859_v58 = vpop.permute.xlu1 %858 }
 0x1e3   : > { %v1195_v1 = vmax.f32 %v1058_v60, 0.0  ;;  %v1061_v8 = vpop.f32.mrb[28].mxu0 }
 0x1e4   : > { %v2668_v9 = vpack.c.bf16 %v1194_v62, %v1192_v61  ;;  %v1063_v3 = vpop.f32.mrb[29].mxu0  ;;  %v1062_v7 = vadd.f32 %v1061_v8, %v824_v4 }
 0x1e5   : > { %v2666_v6 = vpack.c.bf16 %v1195_v1, %v1193_v0  ;;  %v1064_v11 = vadd.f32 %v1063_v3, %v824_v4 }
 0x1e6   : > { %v1196_v16 = vmax.f32 %v1062_v7, 0.0 }
 0x1e7   : > { %v1067_v12 = vpop.f32.mrb[30].mxu0  ;;  %2667 = vmatprep.subr.bf16.mxu1 %v2666_v6  ;;  %v1197_v18 = vmax.f32 %v1064_v11, 0.0 }
 0x1e8   : > { %v1068_v13 = vadd.f32 %v1067_v12, %v829_v10  ;;  %v1069_v14 = vpop.f32.mrb[31].mxu0  ;;  %2669 = vmatpush1.bf16.msra.mxu1 %v2668_v9 }
 0x1e9   : > { %v1070_v15 = vadd.f32 %v1069_v14, %v829_v10  ;;  %v864_v10 = vpop.permute.xlu0 %863 }
 0x1ea   : > { %v1198_v17 = vmax.f32 %v1068_v13, 0.0  ;;  %v869_v13 = vpop.permute.xlu1 %868 }
 0x1eb   : > { %v1199_v19 = vmax.f32 %v1070_v15, 0.0  ;;  %v1073_v20 = vpop.f32.mrb[32].mxu0 }
 0x1ec   : > { %v2672_v21 = vpack.c.bf16 %v1198_v17, %v1196_v16  ;;  %v1075_v22 = vpop.f32.mrb[33].mxu0  ;;  %v1074_v25 = vadd.f32 %v1073_v20, %v834_v23 }
 0x1ed   : > { %v2670_v24 = vpack.c.bf16 %v1199_v19, %v1197_v18  ;;  %v1076_v26 = vadd.f32 %v1075_v22, %v834_v23 }
 0x1ee   : > { %v1200_v31 = vmax.f32 %v1074_v25, 0.0 }
 0x1ef   : > { %v1079_v27 = vpop.f32.mrb[34].mxu0  ;;  %2671 = vmatprep.subr.bf16.mxu1 %v2670_v24  ;;  %v1201_v33 = vmax.f32 %v1076_v26, 0.0 }
 0x1f0   : > { %v1080_v28 = vadd.f32 %v1079_v27, %v839_v40  ;;  %v1081_v29 = vpop.f32.mrb[35].mxu0  ;;  %2673 = vmatpush1.bf16.msra.mxu1 %v2672_v21 }
 0x1f1   : > { %v1082_v30 = vadd.f32 %v1081_v29, %v839_v40  ;;  %v874_v40 = vpop.permute.xlu0 %873 }
 0x1f2   : > { %v1202_v32 = vmax.f32 %v1080_v28, 0.0  ;;  %v879_v28 = vpop.permute.xlu1 %878 }
 0x1f3   : > { %v1203_v34 = vmax.f32 %v1082_v30, 0.0  ;;  %v1085_v35 = vpop.f32.mrb[36].mxu0 }
 0x1f4   : > { %v2676_v36 = vpack.c.bf16 %v1202_v32, %v1200_v31  ;;  %v1087_v37 = vpop.f32.mrb[37].mxu0  ;;  %v1086_v41 = vadd.f32 %v1085_v35, %v844_v38 }
 0x1f5   : > { %v2674_v39 = vpack.c.bf16 %v1203_v34, %v1201_v33  ;;  %v1088_v43 = vadd.f32 %v1087_v37, %v844_v38 }
 0x1f6   : > { %v1204_v48 = vmax.f32 %v1086_v41, 0.0 }
 0x1f7   : > { %v1091_v44 = vpop.f32.mrb[38].mxu0  ;;  %2675 = vmatprep.subr.bf16.mxu1 %v2674_v39  ;;  %v1205_v50 = vmax.f32 %v1088_v43, 0.0 }
 0x1f8   : > { %v1092_v45 = vadd.f32 %v1091_v44, %v849_v42  ;;  %v1093_v46 = vpop.f32.mrb[39].mxu0  ;;  %2677 = vmatpush1.bf16.msra.mxu1 %v2676_v36 }
 0x1f9   : > { %v1094_v47 = vadd.f32 %v1093_v46, %v849_v42  ;;  %v884_v42 = vpop.permute.xlu0 %883 }
 0x1fa   : > { %v1206_v49 = vmax.f32 %v1092_v45, 0.0  ;;  %v889_v45 = vpop.permute.xlu1 %888 }
 0x1fb   : > { %v1207_v51 = vmax.f32 %v1094_v47, 0.0  ;;  %v1097_v52 = vpop.f32.mrb[40].mxu0 }
 0x1fc   : > { %v2680_v53 = vpack.c.bf16 %v1206_v49, %v1204_v48  ;;  %v1099_v54 = vpop.f32.mrb[41].mxu0  ;;  %v1098_v57 = vadd.f32 %v1097_v52, %v854_v55 }
 0x1fd   : > { %v2678_v56 = vpack.c.bf16 %v1207_v51, %v1205_v50  ;;  %v1100_v59 = vadd.f32 %v1099_v54, %v854_v55 }
 0x1fe   : > { %v1208_v1 = vmax.f32 %v1098_v57, 0.0 }
 0x1ff   : > { %v1103_v60 = vpop.f32.mrb[42].mxu0  ;;  %2679 = vmatprep.subr.bf16.mxu1 %v2678_v56  ;;  %v1209_v9 = vmax.f32 %v1100_v59, 0.0 }
 0x200   : > { %v1104_v61 = vadd.f32 %v1103_v60, %v859_v58  ;;  %v1105_v62 = vpop.f32.mrb[43].mxu0  ;;  %2681 = vmatpush1.bf16.msra.mxu1 %v2680_v53 }
 0x201   : > { %v1106_v0 = vadd.f32 %v1105_v62, %v859_v58  ;;  %v894_v58 = vpop.permute.xlu0 %893 }
 0x202   : > { %v1210_v8 = vmax.f32 %v1104_v61, 0.0  ;;  %v899_v61 = vpop.permute.xlu1 %898 }
 0x203   : > { %v1211_v3 = vmax.f32 %v1106_v0, 0.0  ;;  %v1109_v4 = vpop.f32.mrb[44].mxu0 }
 0x204   : > { %v2684_v6 = vpack.c.bf16 %v1210_v8, %v1208_v1  ;;  %v1111_v7 = vpop.f32.mrb[45].mxu0  ;;  %v1110_v12 = vadd.f32 %v1109_v4, %v864_v10 }
 0x205   : > { %v2682_v11 = vpack.c.bf16 %v1211_v3, %v1209_v9  ;;  %v1112_v14 = vadd.f32 %v1111_v7, %v864_v10 }
 0x206   : > { %v1212_v19 = vmax.f32 %v1110_v12, 0.0 }
 0x207   : > { %v1115_v15 = vpop.f32.mrb[46].mxu0  ;;  %2683 = vmatprep.subr.bf16.mxu1 %v2682_v11  ;;  %v1213_v21 = vmax.f32 %v1112_v14, 0.0 }
 0x208   : > { %v1116_v16 = vadd.f32 %v1115_v15, %v869_v13  ;;  %v1117_v17 = vpop.f32.mrb[47].mxu0  ;;  %2685 = vmatpush1.bf16.msra.mxu1 %v2684_v6 }
 0x209   : > { %v1118_v18 = vadd.f32 %v1117_v17, %v869_v13  ;;  %v904_v13 = vpop.permute.xlu0 %903 }
 0x20a   : > { %v1214_v20 = vmax.f32 %v1116_v16, 0.0  ;;  %v909_v16 = vpop.permute.xlu1 %908 }
 0x20b   : > { %v1215_v22 = vmax.f32 %v1118_v18, 0.0  ;;  %v1121_v23 = vpop.f32.mrb[48].mxu0 }
 0x20c   : > { %v2688_v24 = vpack.c.bf16 %v1214_v20, %v1212_v19  ;;  %v1123_v25 = vpop.f32.mrb[49].mxu0  ;;  %v1122_v27 = vadd.f32 %v1121_v23, %v874_v40 }
 0x20d   : > { %v2686_v26 = vpack.c.bf16 %v1215_v22, %v1213_v21  ;;  %v1124_v29 = vadd.f32 %v1123_v25, %v874_v40 }
 0x20e   : > { %v1216_v34 = vmax.f32 %v1122_v27, 0.0  ;;  %v1232_v27 = vld [vmem:[%s4140_s5] sm:$0xff] }
 0x20f   : > { %v1127_v30 = vpop.f32.mrb[50].mxu0  ;;  %2687 = vmatprep.subr.bf16.mxu1 %v2686_v26  ;;  %v1217_v36 = vmax.f32 %v1124_v29, 0.0  ;;  %v1234_v29 = vld [vmem:[%s4140_s5 + $0x10] sm:$0xff] }
 0x210   : > { %v1128_v31 = vadd.f32 %v1127_v30, %v879_v28  ;;  %v1129_v32 = vpop.f32.mrb[51].mxu0  ;;  %2689 = vmatpush1.bf16.msra.mxu1 %v2688_v24  ;;  %v1237_v30 = vld [vmem:[%s4140_s5 + $0x28] sm:$0xff] }
 0x211   : > { %v1130_v33 = vadd.f32 %v1129_v32, %v879_v28  ;;  %v1235_v28 = vld [vmem:[%s4140_s5 + $0x18] sm:$0xff] }
 0x212   : > { %v1218_v35 = vmax.f32 %v1128_v31, 0.0  ;;  %v1236_v31 = vld [vmem:[%s4140_s5 + $0x20] sm:$0xff]  ;;  %v1239_v32 = vld [vmem:[%s4140_s5 + $0x38] sm:$0xff] }
 0x213   : > { %v1219_v37 = vmax.f32 %v1130_v33, 0.0  ;;  %v1133_v38 = vpop.f32.mrb[52].mxu0  ;;  %v1238_v33 = vld [vmem:[%s4140_s5 + $0x30] sm:$0xff] }
 0x214   : > { %v2692_v39 = vpack.c.bf16 %v1218_v35, %v1216_v34  ;;  %v1135_v41 = vpop.f32.mrb[53].mxu0  ;;  %v1134_v44 = vadd.f32 %v1133_v38, %v884_v42  ;;  %v1241_v34 = vld [vmem:[%s4140_s5 + $0x48] sm:$0xff]  ;;  %v1240_v35 = vld [vmem:[%s4140_s5 + $0x40] sm:$0xff] }
 0x215   : > { %v2690_v43 = vpack.c.bf16 %v1219_v37, %v1217_v36  ;;  %v1136_v46 = vadd.f32 %v1135_v41, %v884_v42  ;;  %v1243_v36 = vld [vmem:[%s4140_s5 + $0x58] sm:$0xff]  ;;  %v1242_v37 = vld [vmem:[%s4140_s5 + $0x50] sm:$0xff]  ;;  %v1245_v38 = vld [vmem:[%s4140_s5 + $0x68] sm:$0xff] }
 0x216   : > { %v1220_v51 = vmax.f32 %v1134_v44, 0.0  ;;  %v1247_v41 = vld [vmem:[%s4140_s5 + $0x78] sm:$0xff]  ;;  %v1246_v42 = vld [vmem:[%s4140_s5 + $0x70] sm:$0xff]  ;;  %v1248_v44 = vld [vmem:[%s4140_s5 + $0x80] sm:$0xff] }
 0x217   : > { %v1139_v47 = vpop.f32.mrb[54].mxu0  ;;  %2691 = vmatprep.subr.bf16.mxu1 %v2690_v43  ;;  %v1221_v53 = vmax.f32 %v1136_v46, 0.0  ;;  %v1249_v43 = vld [vmem:[%s4140_s5 + $0x88] sm:$0xff]  ;;  %v1250_v46 = vld [vmem:[%s4140_s5 + $0x90] sm:$0xff] }
 0x218   : > { %v1140_v48 = vadd.f32 %v1139_v47, %v889_v45  ;;  %v1141_v49 = vpop.f32.mrb[55].mxu0  ;;  %2693 = vmatpush1.bf16.msra.mxu1 %v2692_v39  ;;  %v1244_v39 = vld [vmem:[%s4140_s5 + $0x60] sm:$0xff]  ;;  %v1253_v47 = vld [vmem:[%s4140_s5 + $0xa8] sm:$0xff] }
 0x219   : > { %v1142_v50 = vadd.f32 %v1141_v49, %v889_v45  ;;  %v1251_v45 = vld [vmem:[%s4140_s5 + $0x98] sm:$0xff] }
 0x21a   : > { %v1222_v52 = vmax.f32 %v1140_v48, 0.0  ;;  %v1252_v48 = vld [vmem:[%s4140_s5 + $0xa0] sm:$0xff]  ;;  %v1255_v49 = vld [vmem:[%s4140_s5 + $0xb8] sm:$0xff] }
 0x21b   : > { %v1223_v54 = vmax.f32 %v1142_v50, 0.0  ;;  %v1145_v55 = vpop.f32.mrb[56].mxu0  ;;  %v1254_v50 = vld [vmem:[%s4140_s5 + $0xb0] sm:$0xff] }
 0x21c   : > { %v2696_v56 = vpack.c.bf16 %v1222_v52, %v1220_v51  ;;  %v1147_v57 = vpop.f32.mrb[57].mxu0  ;;  %v1146_v60 = vadd.f32 %v1145_v55, %v894_v58  ;;  %v1257_v51 = vld [vmem:[%s4140_s5 + $0xc8] sm:$0xff]  ;;  %v1256_v52 = vld [vmem:[%s4140_s5 + $0xc0] sm:$0xff] }
 0x21d   : > { %v2694_v59 = vpack.c.bf16 %v1223_v54, %v1221_v53  ;;  %v1148_v62 = vadd.f32 %v1147_v57, %v894_v58  ;;  %v1259_v53 = vld [vmem:[%s4140_s5 + $0xd8] sm:$0xff]  ;;  %v1258_v54 = vld [vmem:[%s4140_s5 + $0xd0] sm:$0xff]  ;;  %v1261_v55 = vld [vmem:[%s4140_s5 + $0xe8] sm:$0xff] }
 0x21e   : > { %v1224_v3 = vmax.f32 %v1146_v60, 0.0  ;;  %v1263_v57 = vld [vmem:[%s4140_s5 + $0xf8] sm:$0xff]  ;;  %v1262_v58 = vld [vmem:[%s4140_s5 + $0xf0] sm:$0xff]  ;;  %v1264_v60 = vld [vmem:[%s4140_s5 + $0x100] sm:$0xff] }
 0x21f   : > { %v1151_v0 = vpop.f32.mrb[58].mxu0  ;;  %2695 = vmatprep.subr.bf16.mxu1 %v2694_v59  ;;  %v1225_v6 = vmax.f32 %v1148_v62, 0.0  ;;  %v1265_v59 = vld [vmem:[%s4140_s5 + $0x108] sm:$0xff]  ;;  %v1266_v62 = vld [vmem:[%s4140_s5 + $0x110] sm:$0xff] }
 0x220   : > { %v1152_v1 = vadd.f32 %v1151_v0, %v899_v61  ;;  %v1153_v8 = vpop.f32.mrb[59].mxu0  ;;  %2697 = vmatpush1.bf16.msra.mxu1 %v2696_v56  ;;  %v1260_v56 = vld [vmem:[%s4140_s5 + $0xe0] sm:$0xff]  ;;  %v1269_v0 = vld [vmem:[%s4140_s5 + $0x128] sm:$0xff] }
 0x221   : > { %v1154_v9 = vadd.f32 %v1153_v8, %v899_v61  ;;  %v1267_v61 = vld [vmem:[%s4140_s5 + $0x118] sm:$0xff] }
 0x222   : > { %v1226_v4 = vmax.f32 %v1152_v1, 0.0  ;;  %v1268_v1 = vld [vmem:[%s4140_s5 + $0x120] sm:$0xff]  ;;  %v1271_v8 = vld [vmem:[%s4140_s5 + $0x138] sm:$0xff] }
 0x223   : > { %v1227_v7 = vmax.f32 %v1154_v9, 0.0  ;;  %v1157_v10 = vpop.f32.mrb[60].mxu0  ;;  %v1270_v9 = vld [vmem:[%s4140_s5 + $0x130] sm:$0xff] }
 0x224   : > { %v2700_v11 = vpack.c.bf16 %v1226_v4, %v1224_v3  ;;  %v1159_v12 = vpop.f32.mrb[61].mxu0  ;;  %v1158_v15 = vadd.f32 %v1157_v10, %v904_v13  ;;  %v1273_v3 = vld [vmem:[%s4140_s5 + $0x148] sm:$0xff]  ;;  %v1272_v4 = vld [vmem:[%s4140_s5 + $0x140] sm:$0xff] }
 0x225   : > { %v2698_v14 = vpack.c.bf16 %v1227_v7, %v1225_v6  ;;  %v1160_v17 = vadd.f32 %v1159_v12, %v904_v13  ;;  %v1275_v6 = vld [vmem:[%s4140_s5 + $0x158] sm:$0xff]  ;;  %v1274_v7 = vld [vmem:[%s4140_s5 + $0x150] sm:$0xff]  ;;  %v1277_v10 = vld [vmem:[%s4140_s5 + $0x168] sm:$0xff] }
 0x226   : > { %v1228_v22 = vmax.f32 %v1158_v15, 0.0  ;;  %v1279_v12 = vld [vmem:[%s4140_s5 + $0x178] sm:$0xff]  ;;  %v1278_v13 = vld [vmem:[%s4140_s5 + $0x170] sm:$0xff]  ;;  %v1280_v15 = vld [vmem:[%s4140_s5 + $0x180] sm:$0xff] }
 0x227   : > { %v1163_v18 = vpop.f32.mrb[62].mxu0  ;;  %2699 = vmatprep.subr.bf16.mxu1 %v2698_v14  ;;  %v1229_v24 = vmax.f32 %v1160_v17, 0.0  ;;  %v1281_v14 = vld [vmem:[%s4140_s5 + $0x188] sm:$0xff]  ;;  %v1282_v17 = vld [vmem:[%s4140_s5 + $0x190] sm:$0xff] }
 0x228   : > { %v1164_v19 = vadd.f32 %v1163_v18, %v909_v16  ;;  %v1165_v20 = vpop.f32.mrb[63].mxu0  ;;  %2701 = vmatpush1.bf16.msra.mxu1 %v2700_v11  ;;  %v1276_v11 = vld [vmem:[%s4140_s5 + $0x160] sm:$0xff]  ;;  %v1285_v18 = vld [vmem:[%s4140_s5 + $0x1a8] sm:$0xff] }
 0x229   : > { %v1166_v21 = vadd.f32 %v1165_v20, %v909_v16  ;;  %v1283_v16 = vld [vmem:[%s4140_s5 + $0x198] sm:$0xff] }
 0x22a   : > { %v1230_v23 = vmax.f32 %v1164_v19, 0.0  ;;  %v1284_v19 = vld [vmem:[%s4140_s5 + $0x1a0] sm:$0xff]  ;;  %v1287_v20 = vld [vmem:[%s4140_s5 + $0x1b8] sm:$0xff] }
 0x22b   : > { %v1231_v25 = vmax.f32 %v1166_v21, 0.0  ;;  %v1286_v21 = vld [vmem:[%s4140_s5 + $0x1b0] sm:$0xff] }
 0x22c   : > { %v2704_v40 = vpack.c.bf16 %v1230_v23, %v1228_v22  ;;  %v1289_v22 = vld [vmem:[%s4140_s5 + $0x1c8] sm:$0xff]  ;;  %v1288_v23 = vld [vmem:[%s4140_s5 + $0x1c0] sm:$0xff] }
 0x22d   : > { %v2702_v26 = vpack.c.bf16 %v1231_v25, %v1229_v24  ;;  %v1291_v24 = vld [vmem:[%s4140_s5 + $0x1d8] sm:$0xff]  ;;  %v1290_v25 = vld [vmem:[%s4140_s5 + $0x1d0] sm:$0xff] }
 0x22f   : > { %2703 = vmatprep.subr.bf16.mxu1 %v2702_v26  ;;  %v1292_v26 = vld [vmem:[%s4140_s5 + $0x1e0] sm:$0xff] }
 0x230   : > { %2705 = vmatpush1.bf16.msra.mxu1 %v2704_v40  ;;  %v1293_v40 = vld [vmem:[%s4140_s5 + $0x1e8] sm:$0xff] }
 0x233   : > { %1553 = vmatmul.mubr.f32.vlgmr.msra.gmra.mrb[0].mxu1 %v1232_v27  ;;  %v1295_v27 = vld [vmem:[%s4140_s5 + $0x1f8] sm:$0xff] }
 0x234   : > { %1558 = vmatprep.mubr.f32.mxu1 %v1235_v28  ;;  %v1294_v28 = vld [vmem:[%s4140_s5 + $0x1f0] sm:$0xff] }
 0x237   : > { %1559 = vmatmul.mubr.f32.gmra.mrb[2].mxu1 %v1234_v29 }
 0x238   : > { %1564 = vmatprep.mubr.f32.mxu1 %v1237_v30 }
 0x23b   : > { %1565 = vmatmul.mubr.f32.gmra.mrb[4].mxu1 %v1236_v31  ;;  %v1331_v31 = vpop.permute.xlu0 %1330 }
 0x23c   : > { %1570 = vmatprep.mubr.f32.mxu1 %v1239_v32 }
 0x23f   : > { %1571 = vmatmul.mubr.f32.gmra.mrb[6].mxu1 %v1238_v33  ;;  %v1336_v33 = vpop.permute.xlu1 %1335 }
 0x240   : > { %1576 = vmatprep.mubr.f32.mxu1 %v1241_v34 }
 0x243   : > { %1577 = vmatmul.mubr.f32.gmra.mrb[8].mxu1 %v1240_v35 }
 0x244   : > { %1582 = vmatprep.mubr.f32.mxu1 %v1243_v36 }
 0x247   : > { %1583 = vmatmul.mubr.f32.gmra.mrb[10].mxu1 %v1242_v37 }
 0x248   : > { %1588 = vmatprep.mubr.f32.mxu1 %v1245_v38  ;;  %v1810_v38 = vld [vmem:[%s4142_s7 + $0x8] sm:$0xff] }
 0x249   : > { %2001 = vmatprep.mubr.f32.mxu0 %v1810_v38 }
 0x24b   : > { %1589 = vmatmul.mubr.f32.gmra.mrb[12].mxu1 %v1244_v39  ;;  %v1834_v39 = vld [vmem:[%s4142_s7 + $0xc8] sm:$0xff] }
 0x24c   : > { %1594 = vmatprep.mubr.f32.mxu1 %v1247_v41 }
 0x24f   : > { %1595 = vmatmul.mubr.f32.gmra.mrb[14].mxu1 %v1246_v42 }
 0x250   : > { %1600 = vmatprep.mubr.f32.mxu1 %v1249_v43 }
 0x253   : > { %1601 = vmatmul.mubr.f32.gmra.mrb[16].mxu1 %v1248_v44 }
 0x254   : > { %1606 = vmatprep.mubr.f32.mxu1 %v1251_v45 }
 0x257   : > { %1607 = vmatmul.mubr.f32.gmra.mrb[18].mxu1 %v1250_v46 }
 0x258   : > { %1612 = vmatprep.mubr.f32.mxu1 %v1253_v47 }
 0x25b   : > { %1613 = vmatmul.mubr.f32.gmra.mrb[20].mxu1 %v1252_v48 }
 0x25c   : > { %1618 = vmatprep.mubr.f32.mxu1 %v1255_v49  ;;  %v1341_v49 = vpop.permute.xlu0 %1340 }
 0x25f   : > { %1619 = vmatmul.mubr.f32.gmra.mrb[22].mxu1 %v1254_v50 }
 0x260   : > { %1624 = vmatprep.mubr.f32.mxu1 %v1257_v51 }
 0x263   : > { %1625 = vmatmul.mubr.f32.gmra.mrb[24].mxu1 %v1256_v52  ;;  %v1346_v52 = vpop.permute.xlu1 %1345 }
 0x264   : > { %1630 = vmatprep.mubr.f32.mxu1 %v1259_v53 }
 0x267   : > { %1631 = vmatmul.mubr.f32.gmra.mrb[26].mxu1 %v1258_v54 }
 0x268   : > { %1636 = vmatprep.mubr.f32.mxu1 %v1261_v55 }
 0x26b   : > { %1637 = vmatmul.mubr.f32.gmra.mrb[28].mxu1 %v1260_v56 }
 0x26c   : > { %1642 = vmatprep.mubr.f32.mxu1 %v1263_v57 }
 0x26f   : > { %1643 = vmatmul.mubr.f32.gmra.mrb[30].mxu1 %v1262_v58 }
 0x270   : > { %1648 = vmatprep.mubr.f32.mxu1 %v1265_v59 }
 0x273   : > { %1649 = vmatmul.mubr.f32.gmra.mrb[32].mxu1 %v1264_v60 }
 0x274   : > { %1654 = vmatprep.mubr.f32.mxu1 %v1267_v61 }
 0x277   : > { %1655 = vmatmul.mubr.f32.gmra.mrb[34].mxu1 %v1266_v62 }
 0x278   : > { %1660 = vmatprep.mubr.f32.mxu1 %v1269_v0 }
 0x27b   : > { %1661 = vmatmul.mubr.f32.gmra.mrb[36].mxu1 %v1268_v1 }
 0x27c   : > { %1666 = vmatprep.mubr.f32.mxu1 %v1271_v8  ;;  %v1351_v8 = vpop.permute.xlu0 %1350 }
 0x27f   : > { %1667 = vmatmul.mubr.f32.gmra.mrb[38].mxu1 %v1270_v9 }
 0x280   : > { %1672 = vmatprep.mubr.f32.mxu1 %v1273_v3 }
 0x283   : > { %1673 = vmatmul.mubr.f32.gmra.mrb[40].mxu1 %v1272_v4  ;;  %v1356_v4 = vpop.permute.xlu1 %1355 }
 0x284   : > { %1678 = vmatprep.mubr.f32.mxu1 %v1275_v6 }
 0x287   : > { %1679 = vmatmul.mubr.f32.gmra.mrb[42].mxu1 %v1274_v7 }
 0x288   : > { %1684 = vmatprep.mubr.f32.mxu1 %v1277_v10 }
 0x28b   : > { %1685 = vmatmul.mubr.f32.gmra.mrb[44].mxu1 %v1276_v11 }
 0x28c   : > { %1690 = vmatprep.mubr.f32.mxu1 %v1279_v12 }
 0x28f   : > { %1691 = vmatmul.mubr.f32.gmra.mrb[46].mxu1 %v1278_v13 }
 0x290   : > { %1696 = vmatprep.mubr.f32.mxu1 %v1281_v14 }
 0x293   : > { %1697 = vmatmul.mubr.f32.gmra.mrb[48].mxu1 %v1280_v15 }
 0x294   : > { %1702 = vmatprep.mubr.f32.mxu1 %v1283_v16 }
 0x297   : > { %1703 = vmatmul.mubr.f32.gmra.mrb[50].mxu1 %v1282_v17 }
 0x298   : > { %1708 = vmatprep.mubr.f32.mxu1 %v1285_v18 }
 0x29b   : > { %1709 = vmatmul.mubr.f32.gmra.mrb[52].mxu1 %v1284_v19 }
 0x29c   : > { %1714 = vmatprep.mubr.f32.mxu1 %v1287_v20  ;;  %v1361_v20 = vpop.permute.xlu0 %1360 }
 0x29f   : > { %1715 = vmatmul.mubr.f32.gmra.mrb[54].mxu1 %v1286_v21 }
 0x2a0   : > { %1720 = vmatprep.mubr.f32.mxu1 %v1289_v22 }
 0x2a3   : > { %1721 = vmatmul.mubr.f32.gmra.mrb[56].mxu1 %v1288_v23  ;;  %v1366_v23 = vpop.permute.xlu1 %1365 }
 0x2a4   : > { %1726 = vmatprep.mubr.f32.mxu1 %v1291_v24 }
 0x2a7   : > { %1727 = vmatmul.mubr.f32.gmra.mrb[58].mxu1 %v1290_v25  ;;  %v1376_v38 = vpop.permute.xlu1 %1375 }
 0x2a8   : > { %1732 = vmatprep.mubr.f32.mxu1 %v1293_v40 }
 0x2ab   : > { %1733 = vmatmul.mubr.f32.gmra.mrb[60].mxu1 %v1292_v26 }
 0x2ac   : > { %1738 = vmatprep.mubr.f32.mxu1 %v1295_v27 }
 0x2af   : > { %1739 = vmatmul.mubr.f32.gmra.mrb[62].mxu1 %v1294_v28 }
 0x2b0   : > { %2073 = vmatprep.mubr.f32.mxu1 %v1834_v39 }
 0x306   : > { %v1554_v29 = vpop.f32.mrb[0].mxu1 }
 0x307   : > { %v1556_v30 = vpop.f32.mrb[1].mxu1  ;;  %v1555_v32 = vadd.f32 %v1554_v29, %v1331_v31 }
 0x308   : > { %v1557_v34 = vadd.f32 %v1556_v30, %v1331_v31 }
 0x309   : > { %v1745_v42 = vmax.f32 %v1555_v32, 0.0 }
 0x30a   : > { %v1560_v35 = vpop.f32.mrb[2].mxu1  ;;  %v1746_v44 = vmax.f32 %v1557_v34, 0.0 }
 0x30b   : > { %v1561_v36 = vadd.f32 %v1560_v35, %v1336_v33  ;;  %v1562_v37 = vpop.f32.mrb[3].mxu1  ;;  %v1371_v35 = vpop.permute.xlu0 %1370 }
 0x30c   : > { %v1563_v41 = vadd.f32 %v1562_v37, %v1336_v33 }
 0x30d   : > { %v1747_v43 = vmax.f32 %v1561_v36, 0.0 }
 0x30e   : > { %v1748_v45 = vmax.f32 %v1563_v41, 0.0  ;;  %v1566_v46 = vpop.f32.mrb[4].mxu1 }
 0x30f   : > { %v2708_v47 = vpack.c.bf16 %v1747_v43, %v1745_v42  ;;  %v1568_v48 = vpop.f32.mrb[5].mxu1  ;;  %v1567_v51 = vadd.f32 %v1566_v46, %v1341_v49 }
 0x310   : > { %v2706_v50 = vpack.c.bf16 %v1748_v45, %v1746_v44  ;;  %v1569_v53 = vadd.f32 %v1568_v48, %v1341_v49 }
 0x311   : > { %v1749_v58 = vmax.f32 %v1567_v51, 0.0 }
 0x312   : > { %v1572_v54 = vpop.f32.mrb[6].mxu1  ;;  %2707 = vmatprep.subr.bf16.mxu0 %v2706_v50  ;;  %2770 = vmatprep.subr.bf16.mxu1 %v2706_v50  ;;  %v1750_v60 = vmax.f32 %v1569_v53, 0.0 }
 0x313   : > { %v1573_v55 = vadd.f32 %v1572_v54, %v1346_v52  ;;  %v1574_v56 = vpop.f32.mrb[7].mxu1  ;;  %2709 = vmatpush1.bf16.msra.mxu0 %v2708_v47  ;;  %2786 = vmatpush1.bf16.msra.mxu1 %v2708_v47 }
 0x314   : > { %v1575_v57 = vadd.f32 %v1574_v56, %v1346_v52  ;;  %v1381_v52 = vpop.permute.xlu0 %1380 }
 0x315   : > { %v1751_v59 = vmax.f32 %v1573_v55, 0.0  ;;  %v1386_v55 = vpop.permute.xlu1 %1385 }
 0x316   : > { %v1752_v61 = vmax.f32 %v1575_v57, 0.0  ;;  %v1578_v62 = vpop.f32.mrb[8].mxu1 }
 0x317   : > { %v2712_v0 = vpack.c.bf16 %v1751_v59, %v1749_v58  ;;  %v1580_v1 = vpop.f32.mrb[9].mxu1  ;;  %v1579_v3 = vadd.f32 %v1578_v62, %v1351_v8 }
 0x318   : > { %v2710_v9 = vpack.c.bf16 %v1752_v61, %v1750_v60  ;;  %v1581_v6 = vadd.f32 %v1580_v1, %v1351_v8 }
 0x319   : > { %v1753_v13 = vmax.f32 %v1579_v3, 0.0 }
 0x31a   : > { %v1584_v7 = vpop.f32.mrb[10].mxu1  ;;  %2711 = vmatprep.subr.bf16.mxu0 %v2710_v9  ;;  %2771 = vmatprep.subr.bf16.mxu1 %v2710_v9  ;;  %v1754_v15 = vmax.f32 %v1581_v6, 0.0 }
 0x31b   : > { %v1585_v10 = vadd.f32 %v1584_v7, %v1356_v4  ;;  %v1586_v11 = vpop.f32.mrb[11].mxu1  ;;  %2713 = vmatpush1.bf16.msra.mxu0 %v2712_v0  ;;  %2787 = vmatpush1.bf16.msra.mxu1 %v2712_v0 }
 0x31c   : > { %v1587_v12 = vadd.f32 %v1586_v11, %v1356_v4  ;;  %v1391_v4 = vpop.permute.xlu0 %1390 }
 0x31d   : > { %v1755_v14 = vmax.f32 %v1585_v10, 0.0  ;;  %v1396_v10 = vpop.permute.xlu1 %1395 }
 0x31e   : > { %v1756_v16 = vmax.f32 %v1587_v12, 0.0  ;;  %v1590_v17 = vpop.f32.mrb[12].mxu1 }
 0x31f   : > { %v2716_v18 = vpack.c.bf16 %v1755_v14, %v1753_v13  ;;  %v1592_v19 = vpop.f32.mrb[13].mxu1  ;;  %v1591_v22 = vadd.f32 %v1590_v17, %v1361_v20 }
 0x320   : > { %v2714_v21 = vpack.c.bf16 %v1756_v16, %v1754_v15  ;;  %v1593_v24 = vadd.f32 %v1592_v19, %v1361_v20 }
 0x321   : > { %v1757_v28 = vmax.f32 %v1591_v22, 0.0 }
 0x322   : > { %v1596_v25 = vpop.f32.mrb[14].mxu1  ;;  %2715 = vmatprep.subr.bf16.mxu0 %v2714_v21  ;;  %2772 = vmatprep.subr.bf16.mxu1 %v2714_v21  ;;  %v1758_v30 = vmax.f32 %v1593_v24, 0.0 }
 0x323   : > { %v1597_v40 = vadd.f32 %v1596_v25, %v1366_v23  ;;  %v1598_v26 = vpop.f32.mrb[15].mxu1  ;;  %2717 = vmatpush1.bf16.msra.mxu0 %v2716_v18  ;;  %2788 = vmatpush1.bf16.msra.mxu1 %v2716_v18 }
 0x324   : > { %v1599_v27 = vadd.f32 %v1598_v26, %v1366_v23  ;;  %v1401_v23 = vpop.permute.xlu0 %1400 }
 0x325   : > { %v1759_v29 = vmax.f32 %v1597_v40, 0.0  ;;  %v1406_v40 = vpop.permute.xlu1 %1405 }
 0x326   : > { %v1760_v31 = vmax.f32 %v1599_v27, 0.0  ;;  %v1602_v32 = vpop.f32.mrb[16].mxu1 }
 0x327   : > { %v2720_v33 = vpack.c.bf16 %v1759_v29, %v1757_v28  ;;  %v1604_v34 = vpop.f32.mrb[17].mxu1  ;;  %v1603_v37 = vadd.f32 %v1602_v32, %v1371_v35 }
 0x328   : > { %v2718_v36 = vpack.c.bf16 %v1760_v31, %v1758_v30  ;;  %v1605_v39 = vadd.f32 %v1604_v34, %v1371_v35 }
 0x329   : > { %v1761_v45 = vmax.f32 %v1603_v37, 0.0 }
 0x32a   : > { %v1608_v41 = vpop.f32.mrb[18].mxu1  ;;  %2719 = vmatprep.subr.bf16.mxu0 %v2718_v36  ;;  %2773 = vmatprep.subr.bf16.mxu1 %v2718_v36  ;;  %v1762_v47 = vmax.f32 %v1605_v39, 0.0 }
 0x32b   : > { %v1609_v42 = vadd.f32 %v1608_v41, %v1376_v38  ;;  %v1610_v43 = vpop.f32.mrb[19].mxu1  ;;  %2721 = vmatpush1.bf16.msra.mxu0 %v2720_v33  ;;  %2789 = vmatpush1.bf16.msra.mxu1 %v2720_v33 }
 0x32c   : > { %v1611_v44 = vadd.f32 %v1610_v43, %v1376_v38  ;;  %v1411_v38 = vpop.permute.xlu0 %1410 }
 0x32d   : > { %v1763_v46 = vmax.f32 %v1609_v42, 0.0  ;;  %v1416_v42 = vpop.permute.xlu1 %1415 }
 0x32e   : > { %v1764_v48 = vmax.f32 %v1611_v44, 0.0  ;;  %v1614_v49 = vpop.f32.mrb[20].mxu1 }
 0x32f   : > { %v2724_v50 = vpack.c.bf16 %v1763_v46, %v1761_v45  ;;  %v1616_v51 = vpop.f32.mrb[21].mxu1  ;;  %v1615_v54 = vadd.f32 %v1614_v49, %v1381_v52 }
 0x330   : > { %v2722_v53 = vpack.c.bf16 %v1764_v48, %v1762_v47  ;;  %v1617_v56 = vadd.f32 %v1616_v51, %v1381_v52 }
 0x331   : > { %v1765_v61 = vmax.f32 %v1615_v54, 0.0 }
 0x332   : > { %v1620_v57 = vpop.f32.mrb[22].mxu1  ;;  %2723 = vmatprep.subr.bf16.mxu0 %v2722_v53  ;;  %2774 = vmatprep.subr.bf16.mxu1 %v2722_v53  ;;  %v1766_v0 = vmax.f32 %v1617_v56, 0.0 }
 0x333   : > { %v1621_v58 = vadd.f32 %v1620_v57, %v1386_v55  ;;  %v1622_v59 = vpop.f32.mrb[23].mxu1  ;;  %2725 = vmatpush1.bf16.msra.mxu0 %v2724_v50  ;;  %2790 = vmatpush1.bf16.msra.mxu1 %v2724_v50 }
 0x334   : > { %v1623_v60 = vadd.f32 %v1622_v59, %v1386_v55  ;;  %v1421_v55 = vpop.permute.xlu0 %1420 }
 0x335   : > { %v1767_v62 = vmax.f32 %v1621_v58, 0.0  ;;  %v1426_v58 = vpop.permute.xlu1 %1425 }
 0x336   : > { %v1768_v1 = vmax.f32 %v1623_v60, 0.0  ;;  %v1626_v8 = vpop.f32.mrb[24].mxu1 }
 0x337   : > { %v2728_v9 = vpack.c.bf16 %v1767_v62, %v1765_v61  ;;  %v1628_v3 = vpop.f32.mrb[25].mxu1  ;;  %v1627_v7 = vadd.f32 %v1626_v8, %v1391_v4 }
 0x338   : > { %v2726_v6 = vpack.c.bf16 %v1768_v1, %v1766_v0  ;;  %v1629_v11 = vadd.f32 %v1628_v3, %v1391_v4 }
 0x339   : > { %v1769_v16 = vmax.f32 %v1627_v7, 0.0 }
 0x33a   : > { %v1632_v12 = vpop.f32.mrb[26].mxu1  ;;  %2727 = vmatprep.subr.bf16.mxu0 %v2726_v6  ;;  %2775 = vmatprep.subr.bf16.mxu1 %v2726_v6  ;;  %v1770_v18 = vmax.f32 %v1629_v11, 0.0 }
 0x33b   : > { %v1633_v13 = vadd.f32 %v1632_v12, %v1396_v10  ;;  %v1634_v14 = vpop.f32.mrb[27].mxu1  ;;  %2729 = vmatpush1.bf16.msra.mxu0 %v2728_v9  ;;  %2791 = vmatpush1.bf16.msra.mxu1 %v2728_v9 }
 0x33c   : > { %v1635_v15 = vadd.f32 %v1634_v14, %v1396_v10  ;;  %v1431_v10 = vpop.permute.xlu0 %1430 }
 0x33d   : > { %v1771_v17 = vmax.f32 %v1633_v13, 0.0  ;;  %v1436_v13 = vpop.permute.xlu1 %1435 }
 0x33e   : > { %v1772_v19 = vmax.f32 %v1635_v15, 0.0  ;;  %v1638_v20 = vpop.f32.mrb[28].mxu1 }
 0x33f   : > { %v2732_v21 = vpack.c.bf16 %v1771_v17, %v1769_v16  ;;  %v1640_v22 = vpop.f32.mrb[29].mxu1  ;;  %v1639_v25 = vadd.f32 %v1638_v20, %v1401_v23 }
 0x340   : > { %v2730_v24 = vpack.c.bf16 %v1772_v19, %v1770_v18  ;;  %v1641_v26 = vadd.f32 %v1640_v22, %v1401_v23 }
 0x341   : > { %v1773_v31 = vmax.f32 %v1639_v25, 0.0 }
 0x342   : > { %v1644_v27 = vpop.f32.mrb[30].mxu1  ;;  %2731 = vmatprep.subr.bf16.mxu0 %v2730_v24  ;;  %2776 = vmatprep.subr.bf16.mxu1 %v2730_v24  ;;  %v1774_v33 = vmax.f32 %v1641_v26, 0.0 }
 0x343   : > { %v1645_v28 = vadd.f32 %v1644_v27, %v1406_v40  ;;  %v1646_v29 = vpop.f32.mrb[31].mxu1  ;;  %2733 = vmatpush1.bf16.msra.mxu0 %v2732_v21  ;;  %2792 = vmatpush1.bf16.msra.mxu1 %v2732_v21 }
 0x344   : > { %v1647_v30 = vadd.f32 %v1646_v29, %v1406_v40  ;;  %v1441_v40 = vpop.permute.xlu0 %1440 }
 0x345   : > { %v1775_v32 = vmax.f32 %v1645_v28, 0.0  ;;  %v1446_v28 = vpop.permute.xlu1 %1445 }
 0x346   : > { %v1776_v34 = vmax.f32 %v1647_v30, 0.0  ;;  %v1650_v35 = vpop.f32.mrb[32].mxu1 }
 0x347   : > { %v2736_v36 = vpack.c.bf16 %v1775_v32, %v1773_v31  ;;  %v1652_v37 = vpop.f32.mrb[33].mxu1  ;;  %v1651_v41 = vadd.f32 %v1650_v35, %v1411_v38 }
 0x348   : > { %v2734_v39 = vpack.c.bf16 %v1776_v34, %v1774_v33  ;;  %v1653_v43 = vadd.f32 %v1652_v37, %v1411_v38 }
 0x349   : > { %v1777_v48 = vmax.f32 %v1651_v41, 0.0 }
 0x34a   : > { %v1656_v44 = vpop.f32.mrb[34].mxu1  ;;  %2735 = vmatprep.subr.bf16.mxu0 %v2734_v39  ;;  %2777 = vmatprep.subr.bf16.mxu1 %v2734_v39  ;;  %v1778_v50 = vmax.f32 %v1653_v43, 0.0 }
 0x34b   : > { %v1657_v45 = vadd.f32 %v1656_v44, %v1416_v42  ;;  %v1658_v46 = vpop.f32.mrb[35].mxu1  ;;  %2737 = vmatpush1.bf16.msra.mxu0 %v2736_v36  ;;  %2793 = vmatpush1.bf16.msra.mxu1 %v2736_v36 }
 0x34c   : > { %v1659_v47 = vadd.f32 %v1658_v46, %v1416_v42  ;;  %v1451_v42 = vpop.permute.xlu0 %1450 }
 0x34d   : > { %v1779_v49 = vmax.f32 %v1657_v45, 0.0  ;;  %v1456_v45 = vpop.permute.xlu1 %1455 }
 0x34e   : > { %v1780_v51 = vmax.f32 %v1659_v47, 0.0  ;;  %v1662_v52 = vpop.f32.mrb[36].mxu1 }
 0x34f   : > { %v2740_v53 = vpack.c.bf16 %v1779_v49, %v1777_v48  ;;  %v1664_v54 = vpop.f32.mrb[37].mxu1  ;;  %v1663_v57 = vadd.f32 %v1662_v52, %v1421_v55 }
 0x350   : > { %v2738_v56 = vpack.c.bf16 %v1780_v51, %v1778_v50  ;;  %v1665_v59 = vadd.f32 %v1664_v54, %v1421_v55 }
 0x351   : > { %v1781_v1 = vmax.f32 %v1663_v57, 0.0 }
 0x352   : > { %v1668_v60 = vpop.f32.mrb[38].mxu1  ;;  %2739 = vmatprep.subr.bf16.mxu0 %v2738_v56  ;;  %2778 = vmatprep.subr.bf16.mxu1 %v2738_v56  ;;  %v1782_v9 = vmax.f32 %v1665_v59, 0.0 }
 0x353   : > { %v1669_v61 = vadd.f32 %v1668_v60, %v1426_v58  ;;  %v1670_v62 = vpop.f32.mrb[39].mxu1  ;;  %2741 = vmatpush1.bf16.msra.mxu0 %v2740_v53  ;;  %2794 = vmatpush1.bf16.msra.mxu1 %v2740_v53 }
 0x354   : > { %v1671_v0 = vadd.f32 %v1670_v62, %v1426_v58  ;;  %v1461_v58 = vpop.permute.xlu0 %1460 }
 0x355   : > { %v1783_v8 = vmax.f32 %v1669_v61, 0.0  ;;  %v1466_v61 = vpop.permute.xlu1 %1465 }
 0x356   : > { %v1784_v3 = vmax.f32 %v1671_v0, 0.0  ;;  %v1674_v4 = vpop.f32.mrb[40].mxu1 }
 0x357   : > { %v2744_v6 = vpack.c.bf16 %v1783_v8, %v1781_v1  ;;  %v1676_v7 = vpop.f32.mrb[41].mxu1  ;;  %v1675_v12 = vadd.f32 %v1674_v4, %v1431_v10 }
 0x358   : > { %v2742_v11 = vpack.c.bf16 %v1784_v3, %v1782_v9  ;;  %v1677_v14 = vadd.f32 %v1676_v7, %v1431_v10 }
 0x359   : > { %v1785_v19 = vmax.f32 %v1675_v12, 0.0 }
 0x35a   : > { %v1680_v15 = vpop.f32.mrb[42].mxu1  ;;  %2743 = vmatprep.subr.bf16.mxu0 %v2742_v11  ;;  %2779 = vmatprep.subr.bf16.mxu1 %v2742_v11  ;;  %v1786_v21 = vmax.f32 %v1677_v14, 0.0 }
 0x35b   : > { %v1681_v16 = vadd.f32 %v1680_v15, %v1436_v13  ;;  %v1682_v17 = vpop.f32.mrb[43].mxu1  ;;  %2745 = vmatpush1.bf16.msra.mxu0 %v2744_v6  ;;  %2795 = vmatpush1.bf16.msra.mxu1 %v2744_v6 }
 0x35c   : > { %v1683_v18 = vadd.f32 %v1682_v17, %v1436_v13  ;;  %v1471_v13 = vpop.permute.xlu0 %1470 }
 0x35d   : > { %v1787_v20 = vmax.f32 %v1681_v16, 0.0  ;;  %v1476_v16 = vpop.permute.xlu1 %1475 }
 0x35e   : > { %v1788_v22 = vmax.f32 %v1683_v18, 0.0  ;;  %v1686_v23 = vpop.f32.mrb[44].mxu1 }
 0x35f   : > { %v2748_v24 = vpack.c.bf16 %v1787_v20, %v1785_v19  ;;  %v1688_v25 = vpop.f32.mrb[45].mxu1  ;;  %v1687_v27 = vadd.f32 %v1686_v23, %v1441_v40 }
 0x360   : > { %v2746_v26 = vpack.c.bf16 %v1788_v22, %v1786_v21  ;;  %v1689_v29 = vadd.f32 %v1688_v25, %v1441_v40 }
 0x361   : > { %v1789_v34 = vmax.f32 %v1687_v27, 0.0 }
 0x362   : > { %v1692_v30 = vpop.f32.mrb[46].mxu1  ;;  %2747 = vmatprep.subr.bf16.mxu0 %v2746_v26  ;;  %2780 = vmatprep.subr.bf16.mxu1 %v2746_v26  ;;  %v1790_v36 = vmax.f32 %v1689_v29, 0.0 }
 0x363   : > { %v1693_v31 = vadd.f32 %v1692_v30, %v1446_v28  ;;  %v1694_v32 = vpop.f32.mrb[47].mxu1  ;;  %2749 = vmatpush1.bf16.msra.mxu0 %v2748_v24  ;;  %2796 = vmatpush1.bf16.msra.mxu1 %v2748_v24 }
 0x364   : > { %v1695_v33 = vadd.f32 %v1694_v32, %v1446_v28  ;;  %v1481_v28 = vpop.permute.xlu0 %1480 }
 0x365   : > { %v1791_v35 = vmax.f32 %v1693_v31, 0.0  ;;  %v1486_v31 = vpop.permute.xlu1 %1485 }
 0x366   : > { %v1792_v37 = vmax.f32 %v1695_v33, 0.0  ;;  %v1698_v38 = vpop.f32.mrb[48].mxu1 }
 0x367   : > { %v2752_v39 = vpack.c.bf16 %v1791_v35, %v1789_v34  ;;  %v1700_v41 = vpop.f32.mrb[49].mxu1  ;;  %v1699_v44 = vadd.f32 %v1698_v38, %v1451_v42 }
 0x368   : > { %v2750_v43 = vpack.c.bf16 %v1792_v37, %v1790_v36  ;;  %v1701_v46 = vadd.f32 %v1700_v41, %v1451_v42 }
 0x369   : > { %v1793_v51 = vmax.f32 %v1699_v44, 0.0  ;;  %v1809_v44 = vld [vmem:[%s4142_s7] sm:$0xff] }
 0x36a   : > { %v1704_v47 = vpop.f32.mrb[50].mxu1  ;;  %2751 = vmatprep.subr.bf16.mxu0 %v2750_v43  ;;  %2781 = vmatprep.subr.bf16.mxu1 %v2750_v43  ;;  %v1794_v53 = vmax.f32 %v1701_v46, 0.0  ;;  %v1812_v46 = vld [vmem:[%s4142_s7 + $0x18] sm:$0xff] }
 0x36b   : > { %v1705_v48 = vadd.f32 %v1704_v47, %v1456_v45  ;;  %v1706_v49 = vpop.f32.mrb[51].mxu1  ;;  %2753 = vmatpush1.bf16.msra.mxu0 %v2752_v39  ;;  %2797 = vmatpush1.bf16.msra.mxu1 %v2752_v39  ;;  %v1836_v47 = vld [vmem:[%s4142_s7 + $0xd8] sm:$0xff] }
 0x36c   : > { %v1707_v50 = vadd.f32 %v1706_v49, %v1456_v45  ;;  %v1833_v45 = vld [vmem:[%s4142_s7 + $0xc0] sm:$0xff]  ;;  %v1835_v49 = vld [vmem:[%s4142_s7 + $0xd0] sm:$0xff] }
 0x36d   : > { %v1795_v52 = vmax.f32 %v1705_v48, 0.0  ;;  %v1811_v48 = vld [vmem:[%s4142_s7 + $0x10] sm:$0xff] }
 0x36e   : > { %v1796_v54 = vmax.f32 %v1707_v50, 0.0  ;;  %v1710_v55 = vpop.f32.mrb[52].mxu1  ;;  %v1814_v50 = vld [vmem:[%s4142_s7 + $0x28] sm:$0xff] }
 0x36f   : > { %v2756_v56 = vpack.c.bf16 %v1795_v52, %v1793_v51  ;;  %v1712_v57 = vpop.f32.mrb[53].mxu1  ;;  %v1711_v60 = vadd.f32 %v1710_v55, %v1461_v58  ;;  %v1838_v51 = vld [vmem:[%s4142_s7 + $0xe8] sm:$0xff]  ;;  %v1813_v52 = vld [vmem:[%s4142_s7 + $0x20] sm:$0xff]  ;;  %v1840_v55 = vld [vmem:[%s4142_s7 + $0xf8] sm:$0xff] }
 0x370   : > { %v2754_v59 = vpack.c.bf16 %v1796_v54, %v1794_v53  ;;  %v1713_v62 = vadd.f32 %v1712_v57, %v1461_v58  ;;  %v1837_v53 = vld [vmem:[%s4142_s7 + $0xe0] sm:$0xff]  ;;  %v1816_v54 = vld [vmem:[%s4142_s7 + $0x38] sm:$0xff]  ;;  %v1839_v57 = vld [vmem:[%s4142_s7 + $0xf0] sm:$0xff] }
 0x371   : > { %v1797_v3 = vmax.f32 %v1711_v60, 0.0  ;;  %v1818_v58 = vld [vmem:[%s4142_s7 + $0x48] sm:$0xff]  ;;  %v1820_v60 = vld [vmem:[%s4142_s7 + $0x58] sm:$0xff] }
 0x372   : > { %v1716_v0 = vpop.f32.mrb[54].mxu1  ;;  %2755 = vmatprep.subr.bf16.mxu0 %v2754_v59  ;;  %2782 = vmatprep.subr.bf16.mxu1 %v2754_v59  ;;  %v1798_v6 = vmax.f32 %v1713_v62, 0.0  ;;  %v1817_v59 = vld [vmem:[%s4142_s7 + $0x40] sm:$0xff]  ;;  %v1822_v62 = vld [vmem:[%s4142_s7 + $0x68] sm:$0xff] }
 0x373   : > { %v1717_v1 = vadd.f32 %v1716_v0, %v1466_v61  ;;  %v1718_v8 = vpop.f32.mrb[55].mxu1  ;;  %2757 = vmatpush1.bf16.msra.mxu0 %v2756_v56  ;;  %2798 = vmatpush1.bf16.msra.mxu1 %v2756_v56  ;;  %v1815_v56 = vld [vmem:[%s4142_s7 + $0x30] sm:$0xff]  ;;  %v1821_v0 = vld [vmem:[%s4142_s7 + $0x60] sm:$0xff] }
 0x374   : > { %v1719_v9 = vadd.f32 %v1718_v8, %v1466_v61  ;;  %v1819_v61 = vld [vmem:[%s4142_s7 + $0x50] sm:$0xff] }
 0x375   : > { %v1799_v4 = vmax.f32 %v1717_v1, 0.0  ;;  %v1824_v1 = vld [vmem:[%s4142_s7 + $0x78] sm:$0xff]  ;;  %v1823_v8 = vld [vmem:[%s4142_s7 + $0x70] sm:$0xff] }
 0x376   : > { %v1800_v7 = vmax.f32 %v1719_v9, 0.0  ;;  %v1722_v10 = vpop.f32.mrb[56].mxu1  ;;  %v1826_v9 = vld [vmem:[%s4142_s7 + $0x88] sm:$0xff] }
 0x377   : > { %v2760_v11 = vpack.c.bf16 %v1799_v4, %v1797_v3  ;;  %v1724_v12 = vpop.f32.mrb[57].mxu1  ;;  %v1723_v15 = vadd.f32 %v1722_v10, %v1471_v13  ;;  %v1825_v3 = vld [vmem:[%s4142_s7 + $0x80] sm:$0xff]  ;;  %v1828_v4 = vld [vmem:[%s4142_s7 + $0x98] sm:$0xff] }
 0x378   : > { %v2758_v14 = vpack.c.bf16 %v1800_v7, %v1798_v6  ;;  %v1725_v17 = vadd.f32 %v1724_v12, %v1471_v13  ;;  %v1827_v6 = vld [vmem:[%s4142_s7 + $0x90] sm:$0xff]  ;;  %v1830_v7 = vld [vmem:[%s4142_s7 + $0xa8] sm:$0xff]  ;;  %v1829_v10 = vld [vmem:[%s4142_s7 + $0xa0] sm:$0xff]  ;;  %v1860_v13 = vpop.permute.xlu0 %1859 }
 0x379   : > { %v1801_v22 = vmax.f32 %v1723_v15, 0.0  ;;  %v1831_v12 = vld [vmem:[%s4142_s7 + $0xb0] sm:$0xff] }
 0x37a   : > { %v1728_v18 = vpop.f32.mrb[58].mxu1  ;;  %2759 = vmatprep.subr.bf16.mxu0 %v2758_v14  ;;  %2783 = vmatprep.subr.bf16.mxu1 %v2758_v14  ;;  %v1802_v24 = vmax.f32 %v1725_v17, 0.0  ;;  %v1865_v14 = vpop.permute.xlu1 %1864 }
 0x37b   : > { %v1729_v19 = vadd.f32 %v1728_v18, %v1476_v16  ;;  %v1730_v20 = vpop.f32.mrb[59].mxu1  ;;  %2761 = vmatpush1.bf16.msra.mxu0 %v2760_v11  ;;  %2799 = vmatpush1.bf16.msra.mxu1 %v2760_v11  ;;  %v1832_v11 = vld [vmem:[%s4142_s7 + $0xb8] sm:$0xff] }
 0x37c   : > { %v1731_v21 = vadd.f32 %v1730_v20, %v1476_v16  ;;  %v1870_v15 = vpop.permute.xlu0 %1869 }
 0x37d   : > { %v1803_v23 = vmax.f32 %v1729_v19, 0.0 }
 0x37e   : > { %v1804_v25 = vmax.f32 %v1731_v21, 0.0  ;;  %v1734_v40 = vpop.f32.mrb[60].mxu1  ;;  %v4000_v16 = vpop.permute.xlu1 %1874 }
 0x37f   : > { %v2764_v26 = vpack.c.bf16 %v1803_v23, %v1801_v22  ;;  %v1736_v27 = vpop.f32.mrb[61].mxu1  ;;  %v1735_v30 = vadd.f32 %v1734_v40, %v1481_v28 }
 0x380   : > { %v2762_v29 = vpack.c.bf16 %v1804_v25, %v1802_v24  ;;  %v1737_v32 = vadd.f32 %v1736_v27, %v1481_v28  ;;  %v4002_v17 = vpop.permute.xlu0 %1879 }
 0x381   : > { %v1805_v37 = vmax.f32 %v1735_v30, 0.0 }
 0x382   : > { %v1740_v33 = vpop.f32.mrb[62].mxu1  ;;  %2763 = vmatprep.subr.bf16.mxu0 %v2762_v29  ;;  %2784 = vmatprep.subr.bf16.mxu1 %v2762_v29  ;;  %v1806_v39 = vmax.f32 %v1737_v32, 0.0  ;;  %v4004_v18 = vpop.permute.xlu1 %1884 }
 0x383   : > { %v1741_v34 = vadd.f32 %v1740_v33, %v1486_v31  ;;  %v1742_v35 = vpop.f32.mrb[63].mxu1  ;;  %2765 = vmatpush1.bf16.msra.mxu0 %v2764_v26  ;;  %2800 = vmatpush1.bf16.msra.mxu1 %v2764_v26 }
 0x384   : > { %v1743_v36 = vadd.f32 %v1742_v35, %v1486_v31  ;;  %v4006_v19 = vpop.permute.xlu0 %1889 }
 0x385   : > { %v1807_v38 = vmax.f32 %v1741_v34, 0.0 }
 0x386   : > { %v1808_v41 = vmax.f32 %v1743_v36, 0.0  ;;  %v4008_v20 = vpop.permute.xlu1 %1894 }
 0x387   : > { %v2768_v42 = vpack.c.bf16 %v1807_v38, %v1805_v37 }
 0x388   : > { %v2766_v43 = vpack.c.bf16 %v1808_v41, %v1806_v39  ;;  %v4010_v26 = vpop.permute.xlu0 %1899 }
 0x38a   : > { %2767 = vmatprep.subr.bf16.mxu0 %v2766_v43  ;;  %2785 = vmatprep.subr.bf16.mxu1 %v2766_v43  ;;  %v4012_v35 = vpop.permute.xlu1 %1904 }
 0x38b   : > { %2769 = vmatpush1.bf16.msra.mxu0 %v2768_v42  ;;  %2801 = vmatpush1.bf16.msra.mxu1 %v2768_v42 }
 0x38e   : > { %2002 = vmatmul.mubr.f32.vlgmr.msra.gmra.mrb[64].mxu0 %v1809_v44  ;;  %2074 = vmatmul.mubr.f32.vlgmr.msra.gmra.mrb[64].mxu1 %v1833_v45  ;;  %v4018_v44 = vpop.permute.xlu0 %1909 }
 0x38f   : > { %2007 = vmatprep.mubr.f32.mxu0 %v1812_v46  ;;  %2079 = vmatprep.mubr.f32.mxu1 %v1836_v47 }
 0x392   : > { %2008 = vmatmul.mubr.f32.gmra.mrb[66].mxu0 %v1811_v48  ;;  %2080 = vmatmul.mubr.f32.gmra.mrb[66].mxu1 %v1835_v49 }
 0x393   : > { %2013 = vmatprep.mubr.f32.mxu0 %v1814_v50  ;;  %2085 = vmatprep.mubr.f32.mxu1 %v1838_v51 }
 0x396   : > { %2014 = vmatmul.mubr.f32.gmra.mrb[68].mxu0 %v1813_v52  ;;  %2086 = vmatmul.mubr.f32.gmra.mrb[68].mxu1 %v1837_v53  ;;  %v4025_v53 = vpop.permute.xlu1 %1914 }
 0x397   : > { %2019 = vmatprep.mubr.f32.mxu0 %v1816_v54  ;;  %2091 = vmatprep.mubr.f32.mxu1 %v1840_v55 }
 0x39a   : > { %2020 = vmatmul.mubr.f32.gmra.mrb[70].mxu0 %v1815_v56  ;;  %2092 = vmatmul.mubr.f32.gmra.mrb[70].mxu1 %v1839_v57  ;;  %v1920_v56 = vpop.permute.xlu0 %1919 }
 0x39b   : > { %2025 = vmatprep.mubr.f32.mxu0 %v1818_v58 }
 0x39e   : > { %2026 = vmatmul.mubr.f32.gmra.mrb[72].mxu0 %v1817_v59 }
 0x39f   : > { %2031 = vmatprep.mubr.f32.mxu0 %v1820_v60 }
 0x3a2   : > { %2032 = vmatmul.mubr.f32.gmra.mrb[74].mxu0 %v1819_v61 }
 0x3a3   : > { %2037 = vmatprep.mubr.f32.mxu0 %v1822_v62 }
 0x3a6   : > { %2038 = vmatmul.mubr.f32.gmra.mrb[76].mxu0 %v1821_v0 }
 0x3a7   : > { %2043 = vmatprep.mubr.f32.mxu0 %v1824_v1 }
 0x3aa   : > { %2044 = vmatmul.mubr.f32.gmra.mrb[78].mxu0 %v1823_v8  ;;  %v1925_v8 = vpop.permute.xlu1 %1924 }
 0x3ab   : > { %2049 = vmatprep.mubr.f32.mxu0 %v1826_v9 }
 0x3ae   : > { %2050 = vmatmul.mubr.f32.gmra.mrb[80].mxu0 %v1825_v3 }
 0x3af   : > { %2055 = vmatprep.mubr.f32.mxu0 %v1828_v4 }
 0x3b2   : > { %2056 = vmatmul.mubr.f32.gmra.mrb[82].mxu0 %v1827_v6 }
 0x3b3   : > { %2061 = vmatprep.mubr.f32.mxu0 %v1830_v7 }
 0x3b6   : > { %2062 = vmatmul.mubr.f32.gmra.mrb[84].mxu0 %v1829_v10 }
 0x3b7   : > { %2067 = vmatprep.mubr.f32.mxu0 %v1832_v11 }
 0x3ba   : > { %2068 = vmatmul.mubr.f32.gmra.mrb[86].mxu0 %v1831_v12 }
 0x461   : > { %v2003_v21 = vpop.f32.mrb[64].mxu0  ;;  %v2075_v22 = vpop.f32.mrb[64].mxu1 }
 0x462   : > { %v2004_v23 = vadd.f32 %v2003_v21, %v1860_v13  ;;  %v2005_v24 = vpop.f32.mrb[65].mxu0  ;;  %v2077_v25 = vpop.f32.mrb[65].mxu1  ;;  %v2076_v60 = vadd.f32 %v2075_v22, %v1920_v56 }
 0x463   : > { %v2006_v40 = vadd.f32 %v2005_v24, %v1860_v13  ;;  %v2078_v1 = vadd.f32 %v2077_v25, %v1920_v56  ;;  %v4028_v21 = vpop.permute.xlu0 %1929 }
 0x464   : > { %v2572_v27 = vmul.f32 -1.442695, %v2004_v23  ;;  %v2596_v6 = vmul.f32 -1.442695, %v2076_v60 }
 0x465   : > { %v2573_v28 = vmul.f32 -1.442695, %v2006_v40  ;;  %v2009_v29 = vpop.f32.mrb[66].mxu0  ;;  %v2081_v30 = vpop.f32.mrb[66].mxu1  ;;  %v2597_v13 = vmul.f32 -1.442695, %v2078_v1 }
 0x466   : > { %2846 = vpow2.f32 %v2572_v27  ;;  %v2010_v31 = vadd.f32 %v2009_v29, %v1865_v14  ;;  %v2011_v32 = vpop.f32.mrb[67].mxu0  ;;  %v2083_v33 = vpop.f32.mrb[67].mxu1  ;;  %v2082_v7 = vadd.f32 %v2081_v30, %v1925_v8 }
 0x467   : > { %v2012_v34 = vadd.f32 %v2011_v32, %v1865_v14  ;;  %2848 = vpow2.f32 %v2573_v28  ;;  %v2084_v14 = vadd.f32 %v2083_v33, %v1925_v8  ;;  %v4030_v27 = vpop.permute.xlu1 %1934 }
 0x468   : > { %v2574_v36 = vmul.f32 -1.442695, %v2010_v31  ;;  %v2598_v25 = vmul.f32 -1.442695, %v2082_v7 }
 0x469   : > { %v2575_v37 = vmul.f32 -1.442695, %v2012_v34  ;;  %v2015_v38 = vpop.f32.mrb[68].mxu0  ;;  %v4014_v39 = vpop.f32.mrb[68].mxu1  ;;  %v2599_v31 = vmul.f32 -1.442695, %v2084_v14 }
 0x46a   : > { %2850 = vpow2.f32 %v2574_v36  ;;  %v2016_v41 = vadd.f32 %v2015_v38, %v1870_v15  ;;  %v2017_v42 = vpop.f32.mrb[69].mxu0  ;;  %v4016_v43 = vpop.f32.mrb[69].mxu1 }
 0x46b   : > { %v2018_v45 = vadd.f32 %v2017_v42, %v1870_v15  ;;  %2852 = vpow2.f32 %v2575_v37 }
 0x46c   : > { %v2576_v46 = vmul.f32 -1.442695, %v2016_v41 }
 0x46d   : > { %v2577_v47 = vmul.f32 -1.442695, %v2018_v45  ;;  %v2021_v48 = vpop.f32.mrb[70].mxu0  ;;  %v4020_v49 = vpop.f32.mrb[70].mxu1 }
 0x46e   : > { %2854 = vpow2.f32 %v2576_v46  ;;  %v2022_v50 = vadd.f32 %v2021_v48, %v4000_v16  ;;  %v2023_v51 = vpop.f32.mrb[71].mxu0  ;;  %v4023_v52 = vpop.f32.mrb[71].mxu1 }
 0x46f   : > { %2856 = vpow2.f32 %v2577_v47  ;;  %v2024_v15 = vadd.f32 %v2023_v51, %v4000_v16  ;;  %v2309_v45 = vpop.permute.xlu0 %2308  ;;  %v2314_v51 = vpop.permute.xlu1 %2313 }
 0x470   : > { %v2847_v54 = vpop.eup %2846  ;;  %v2578_v55 = vmul.f32 -1.442695, %v2022_v50 }
 0x471   : > { %v2194_v57 = vadd.f32 1.0, %v2847_v54  ;;  %v2027_v58 = vpop.f32.mrb[72].mxu0  ;;  %v2849_v59 = vpop.eup %2848  ;;  %v2579_v32 = vmul.f32 -1.442695, %v2024_v15 }
 0x472   : > { %2858 = vpow2.f32 %v2578_v55  ;;  %v2029_v61 = vpop.f32.mrb[73].mxu0  ;;  %v2195_v62 = vadd.f32 1.0, %v2849_v59  ;;  %v2028_v29 = vadd.f32 %v2027_v58, %v4002_v17 }
 0x473   : > { %2860 = vrcp.f32 %v2194_v57  ;;  %v2030_v16 = vadd.f32 %v2029_v61, %v4002_v17  ;;  %v2319_v7 = vpop.permute.xlu0 %2318 }
 0x474   : > { %v2851_v0 = vpop.eup %2850  ;;  %2862 = vrcp.f32 %v2195_v62  ;;  %v2580_v46 = vmul.f32 -1.442695, %v2028_v29 }
 0x475   : > { %v2196_v9 = vadd.f32 1.0, %v2851_v0  ;;  %v2033_v3 = vpop.f32.mrb[74].mxu0  ;;  %v2853_v4 = vpop.eup %2852  ;;  %v2581_v17 = vmul.f32 -1.442695, %v2030_v16 }
 0x476   : > { %v2035_v10 = vpop.f32.mrb[75].mxu0  ;;  %v2197_v11 = vadd.f32 1.0, %v2853_v4  ;;  %v2034_v34 = vadd.f32 %v2033_v3, %v4004_v18 }
 0x477   : > { %2864 = vrcp.f32 %v2196_v9  ;;  %v2036_v36 = vadd.f32 %v2035_v10, %v4004_v18  ;;  %v2088_v10 = vadd.f32 %v4014_v39, %v4028_v21 }
 0x478   : > { %v2855_v12 = vpop.eup %2854  ;;  %2866 = vrcp.f32 %v2197_v11  ;;  %v2582_v54 = vmul.f32 -1.442695, %v2034_v34 }
 0x479   : > { %v2198_v22 = vadd.f32 1.0, %v2855_v12  ;;  %v2039_v23 = vpop.f32.mrb[76].mxu0  ;;  %v2857_v24 = vpop.eup %2856  ;;  %2868 = vpow2.f32 %v2596_v6  ;;  %v2583_v55 = vmul.f32 -1.442695, %v2036_v36 }
 0x47a   : > { %v2041_v40 = vpop.f32.mrb[77].mxu0  ;;  %v2199_v28 = vadd.f32 1.0, %v2857_v24  ;;  %v2040_v38 = vadd.f32 %v2039_v23, %v4006_v19  ;;  %v2090_v24 = vadd.f32 %v4016_v43, %v4028_v21 }
 0x47b   : > { %2870 = vrcp.f32 %v2198_v22  ;;  %v2042_v47 = vadd.f32 %v2041_v40, %v4006_v19 }
 0x47c   : > { %v2859_v30 = vpop.eup %2858  ;;  %2872 = vpow2.f32 %v2597_v13  ;;  %v2584_v59 = vmul.f32 -1.442695, %v2040_v38  ;;  %v2601_v36 = vmul.f32 -1.442695, %v2090_v24  ;;  %v2096_v24 = vadd.f32 %v4023_v52, %v4030_v27 }
 0x47d   : > { %2874 = vrcp.f32 %v2199_v28  ;;  %v2200_v33 = vadd.f32 1.0, %v2859_v30  ;;  %v2045_v37 = vpop.f32.mrb[78].mxu0  ;;  %v2861_v42 = vpop.eup %2860  ;;  %v2585_v19 = vmul.f32 -1.442695, %v2042_v47 }
 0x47e   : > { %2876 = vpow2.f32 %v2598_v25  ;;  %v2047_v41 = vpop.f32.mrb[79].mxu0  ;;  %v2863_v48 = vpop.eup %2862  ;;  %v2046_v18 = vadd.f32 %v2045_v37, %v4008_v20  ;;  %v2386_v57 = vmul.f32 %v2861_v42, %v2309_v45 }
 0x47f   : > { %2878 = vrcp.f32 %v2200_v33  ;;  %v2048_v60 = vadd.f32 %v2047_v41, %v4008_v20  ;;  %v2387_v0 = vmul.f32 %v2863_v48, %v2309_v45  ;;  %v4052_v30 = vpop.permute.xlu1 %2323 }
 0x480   : > { %2880 = vpow2.f32 %v2599_v31  ;;  %v2586_v20 = vmul.f32 -1.442695, %v2046_v18  ;;  %v2600_v31 = vmul.f32 -1.442695, %v2088_v10 }
 0x481   : > { %v2865_v50 = vpop.eup %2864  ;;  %2882 = vpow2.f32 %v2579_v32  ;;  %v2051_v56 = vpop.f32.mrb[80].mxu0  ;;  %v2587_v15 = vmul.f32 -1.442695, %v2048_v60 }
 0x482   : > { %v2388_v58 = vmul.f32 %v2865_v50, %v2314_v51  ;;  %v2053_v61 = vpop.f32.mrb[81].mxu0  ;;  %v2867_v62 = vpop.eup %2866  ;;  %2884 = vpow2.f32 %v2580_v46  ;;  %v2052_v1 = vadd.f32 %v2051_v56, %v4010_v26 }
 0x483   : > { %v4041_v8 = vpop.eup %2868  ;;  %v2389_v3 = vmul.f32 %v2867_v62, %v2314_v51  ;;  %2886 = vpow2.f32 %v2581_v17  ;;  %v2054_v4 = vadd.f32 %v2053_v61, %v4010_v26 }
 0x484   : > { %v2418_v9 = vadd.f32 %v2388_v58, %v2386_v57  ;;  %2888 = vpow2.f32 %v2582_v54  ;;  %v2588_v26 = vmul.f32 -1.442695, %v2052_v1 }
 0x485   : > { %v2871_v6 = vpop.eup %2870  ;;  %v2057_v11 = vpop.f32.mrb[82].mxu0  ;;  %v2439_v13 = vadd.f32 %v2389_v3, %v2387_v0  ;;  %2890 = vpow2.f32 %v2583_v55  ;;  %v2589_v28 = vmul.f32 -1.442695, %v2054_v4 }
 0x486   : > { %v4046_v12 = vpop.eup %2872  ;;  %v2390_v14 = vmul.f32 %v2871_v6, %v2319_v7  ;;  %v2059_v22 = vpop.f32.mrb[83].mxu0  ;;  %2892 = vpow2.f32 %v2584_v59  ;;  %v2058_v57 = vadd.f32 %v2057_v11, %v4012_v35 }
 0x487   : > { %v2875_v23 = vpop.eup %2874  ;;  %2894 = vpow2.f32 %v2585_v19  ;;  %v2060_v60 = vadd.f32 %v2059_v22, %v4012_v35  ;;  %v2329_v4 = vpop.permute.xlu0 %2328 }
 0x488   : > { %v4050_v25 = vpop.eup %2876  ;;  %v2419_v40 = vadd.f32 %v2418_v9, %v2390_v14  ;;  %v2391_v39 = vmul.f32 %v2875_v23, %v2319_v7  ;;  %2896 = vpow2.f32 %v2586_v20  ;;  %v2590_v7 = vmul.f32 -1.442695, %v2058_v57 }
 0x489   : > { %v2879_v29 = vpop.eup %2878  ;;  %v2063_v32 = vpop.f32.mrb[84].mxu0  ;;  %2898 = vpow2.f32 %v2587_v15  ;;  %v2591_v11 = vmul.f32 -1.442695, %v2060_v60  ;;  %v2094_v15 = vadd.f32 %v4020_v49, %v4030_v27  ;;  %v2219_v57 = vadd.f32 1.0, %v4046_v12 }
 0x48a   : > { %v4054_v16 = vpop.eup %2880  ;;  %v4056_v33 = vadd.f32 %v2439_v13, %v2391_v39  ;;  %v2392_v43 = vmul.f32 %v2879_v29, %v4052_v30  ;;  %v2065_v21 = vpop.f32.mrb[85].mxu0  ;;  %2900 = vpow2.f32 %v2588_v26  ;;  %v2064_v0 = vadd.f32 %v2063_v32, %v4018_v44 }
 0x48b   : > { %v2883_v34 = vpop.eup %2882  ;;  %2902 = vpow2.f32 %v2589_v28  ;;  %v2066_v9 = vadd.f32 %v2065_v21, %v4018_v44  ;;  %v2334_v39 = vpop.permute.xlu1 %2333  ;;  %v2602_v21 = vmul.f32 -1.442695, %v2094_v15 }
 0x48c   : > { %v4059_v37 = vadd.f32 %v2419_v40, %v2392_v43  ;;  %v2201_v38 = vadd.f32 1.0, %v2883_v34  ;;  %v2885_v41 = vpop.eup %2884  ;;  %2904 = vpow2.f32 %v2600_v31  ;;  %v2592_v44 = vmul.f32 -1.442695, %v2064_v0  ;;  %v2339_v43 = vpop.permute.xlu0 %2338 }
 0x48d   : > { %v2069_v42 = vpop.f32.mrb[86].mxu0  ;;  %v2887_v45 = vpop.eup %2886  ;;  %v2202_v46 = vadd.f32 1.0, %v2885_v41  ;;  %v2593_v26 = vmul.f32 -1.442695, %v2066_v9 }
 0x48e   : > { %2906 = vrcp.f32 %v2201_v38  ;;  %v2071_v47 = vpop.f32.mrb[87].mxu0  ;;  %v2889_v48 = vpop.eup %2888  ;;  %v2203_v17 = vadd.f32 1.0, %v2887_v45  ;;  %v2070_v10 = vadd.f32 %v2069_v42, %v4025_v53 }
 0x48f   : > { %2908 = vpow2.f32 %v2601_v36  ;;  %v2891_v50 = vpop.eup %2890  ;;  %v2204_v51 = vadd.f32 1.0, %v2889_v48  ;;  %v2072_v13 = vadd.f32 %v2071_v47, %v4025_v53  ;;  %v2603_v36 = vmul.f32 -1.442695, %v2096_v24  ;;  %v2344_v48 = vpop.permute.xlu1 %2343 }
 0x490   : > { %2910 = vrcp.f32 %v2202_v46  ;;  %v2893_v54 = vpop.eup %2892  ;;  %v2205_v55 = vadd.f32 1.0, %v2891_v50  ;;  %v2594_v28 = vmul.f32 -1.442695, %v2070_v10 }
 0x491   : > { %2912 = vrcp.f32 %v2203_v17  ;;  %v2895_v18 = vpop.eup %2894  ;;  %v2206_v56 = vadd.f32 1.0, %v2893_v54  ;;  %v2595_v49 = vmul.f32 -1.442695, %v2072_v13  ;;  %v2218_v54 = vadd.f32 1.0, %v4041_v8 }
 0x492   : > { %2914 = vrcp.f32 %v2204_v51  ;;  %v2897_v58 = vpop.eup %2896  ;;  %v2207_v59 = vadd.f32 1.0, %v2895_v18 }
 0x493   : > { %2916 = vrcp.f32 %v2205_v55  ;;  %v2899_v61 = vpop.eup %2898  ;;  %v2208_v62 = vadd.f32 1.0, %v2897_v58 }
 0x494   : > { %2918 = vrcp.f32 %v2206_v56  ;;  %v2901_v19 = vpop.eup %2900  ;;  %v2209_v1 = vadd.f32 1.0, %v2899_v61  ;;  %v2349_v56 = vpop.permute.xlu0 %2348 }
 0x495   : > { %2920 = vrcp.f32 %v2207_v59  ;;  %v2903_v3 = vpop.eup %2902  ;;  %v2210_v6 = vadd.f32 1.0, %v2901_v19 }
 0x496   : > { %2922 = vrcp.f32 %v2208_v62  ;;  %v4066_v20 = vpop.eup %2904  ;;  %v2211_v35 = vadd.f32 1.0, %v2903_v3 }
 0x497   : > { %2924 = vrcp.f32 %v2209_v1 }
 0x498   : > { %v2907_v14 = vpop.eup %2906  ;;  %2926 = vrcp.f32 %v2210_v6 }
 0x499   : > { %v4071_v22 = vpop.eup %2908  ;;  %v2393_v23 = vmul.f32 %v2907_v14, %v4052_v30  ;;  %2928 = vrcp.f32 %v2211_v35  ;;  %v2220_v14 = vadd.f32 1.0, %v4050_v25 }
 0x49a   : > { %v2911_v40 = vpop.eup %2910  ;;  %2930 = vpow2.f32 %v2590_v7 }
 0x49b   : > { %v2913_v53 = vpop.eup %2912  ;;  %v2441_v29 = vadd.f32 %v4056_v33, %v2393_v23  ;;  %v2394_v31 = vmul.f32 %v2911_v40, %v2329_v4  ;;  %2932 = vpow2.f32 %v2591_v11  ;;  %v2221_v23 = vadd.f32 1.0, %v4054_v16  ;;  %v2354_v40 = vpop.permute.xlu1 %2353 }
 0x49c   : > { %v2915_v32 = vpop.eup %2914  ;;  %v2395_v34 = vmul.f32 %v2913_v53, %v2329_v4  ;;  %2934 = vpow2.f32 %v2592_v44 }
 0x49d   : > { %v2917_v30 = vpop.eup %2916  ;;  %v2421_v52 = vadd.f32 %v4059_v37, %v2394_v31  ;;  %v2396_v27 = vmul.f32 %v2915_v32, %v2334_v39  ;;  %2936 = vpow2.f32 %v2593_v26  ;;  %v2359_v31 = vpop.permute.xlu0 %2358 }
 0x49e   : > { %v2919_v38 = vpop.eup %2918  ;;  %v2442_v41 = vadd.f32 %v2441_v29, %v2395_v34  ;;  %v2397_v42 = vmul.f32 %v2917_v30, %v2334_v39  ;;  %2938 = vpow2.f32 %v2594_v28  ;;  %v2222_v39 = vadd.f32 1.0, %v4066_v20 }
 0x49f   : > { %v2921_v45 = vpop.eup %2920  ;;  %v2422_v33 = vadd.f32 %v2421_v52, %v2396_v27  ;;  %v2398_v46 = vmul.f32 %v2919_v38, %v2339_v43  ;;  %2940 = vpow2.f32 %v2595_v49  ;;  %v2223_v28 = vadd.f32 1.0, %v4071_v22  ;;  %v2364_v32 = vpop.permute.xlu1 %2363 }
 0x4a0   : > { %v2923_v47 = vpop.eup %2922  ;;  %2942 = vpow2.f32 %v2602_v21  ;;  %v2443_v17 = vadd.f32 %v2442_v41, %v2397_v42  ;;  %v2399_v50 = vmul.f32 %v2921_v45, %v2339_v43 }
 0x4a1   : > { %v2925_v51 = vpop.eup %2924  ;;  %2944 = vpow2.f32 %v2603_v36  ;;  %v2423_v37 = vadd.f32 %v2422_v33, %v2398_v46  ;;  %v2400_v55 = vmul.f32 %v2923_v47, %v2344_v48  ;;  %v2369_v27 = vpop.permute.xlu0 %2368 }
 0x4a2   : > { %v2927_v18 = vpop.eup %2926  ;;  %v2444_v58 = vadd.f32 %v2443_v17, %v2399_v50  ;;  %v2401_v59 = vmul.f32 %v2925_v51, %v2344_v48  ;;  %2946 = vrcp.f32 %v2218_v54 }
 0x4a3   : > { %v2929_v60 = vpop.eup %2928  ;;  %v2424_v61 = vadd.f32 %v2423_v37, %v2400_v55  ;;  %v2402_v62 = vmul.f32 %v2927_v18, %v2349_v56  ;;  %2948 = vrcp.f32 %v2219_v57  ;;  %v2374_v47 = vpop.permute.xlu1 %2373 }
 0x4a4   : > { %v2931_v0 = vpop.eup %2930  ;;  %v2445_v19 = vadd.f32 %v2444_v58, %v2401_v59  ;;  %v2403_v1 = vmul.f32 %v2929_v60, %v2349_v56 }
 0x4a5   : > { %v2933_v9 = vpop.eup %2932  ;;  %v2425_v3 = vadd.f32 %v2424_v61, %v2402_v62  ;;  %v2212_v4 = vadd.f32 1.0, %v2931_v0  ;;  %v2379_v60 = vpop.permute.xlu0 %2378 }
 0x4a6   : > { %v2935_v8 = vpop.eup %2934  ;;  %v2446_v6 = vadd.f32 %v2445_v19, %v2403_v1  ;;  %v2213_v7 = vadd.f32 1.0, %v2933_v9 }
 0x4a7   : > { %v2937_v10 = vpop.eup %2936  ;;  %2950 = vrcp.f32 %v2212_v4  ;;  %v2214_v35 = vadd.f32 1.0, %v2935_v8  ;;  %v2384_v9 = vpop.permute.xlu1 %2383 }
 0x4a8   : > { %v2939_v12 = vpop.eup %2938  ;;  %2952 = vrcp.f32 %v2213_v7  ;;  %v2215_v11 = vadd.f32 1.0, %v2937_v10 }
 0x4a9   : > { %v2941_v13 = vpop.eup %2940  ;;  %2954 = vrcp.f32 %v2214_v35  ;;  %v2216_v15 = vadd.f32 1.0, %v2939_v12 }
 0x4aa   : > { %v2943_v44 = vpop.eup %2942  ;;  %2956 = vrcp.f32 %v2215_v11  ;;  %v2217_v24 = vadd.f32 1.0, %v2941_v13 }
 0x4ab   : > { %v2945_v26 = vpop.eup %2944  ;;  %2958 = vrcp.f32 %v2216_v15  ;;  %v2224_v53 = vadd.f32 1.0, %v2943_v44 }
 0x4ac   : > { %2960 = vrcp.f32 %v2217_v24  ;;  %v2225_v29 = vadd.f32 1.0, %v2945_v26  ;;  %v2947_v25 = vpop.eup %2946  ;;  %v3040_v24 = vmov 1966171168  }
 0x4ad   : > { %2962 = vrcp.f32 %v2220_v14  ;;  %v2949_v49 = vpop.eup %2948  ;;  %v2410_v51 = vmul.f32 %v2947_v25, %v2369_v27  ;;  %v2476_v26 = vunpack.c.l.s4 %v3040_v24 }
 0x4ae   : > { %2964 = vrcp.f32 %v2221_v23  ;;  %v2411_v55 = vmul.f32 %v2949_v49, %v2369_v27 }
 0x4af   : > { %2966 = vrcp.f32 %v2222_v39  ;;  %v2464_v39 = vpop.permute.xlu0 %2463  ;;  %v2477_v25 = vunpack.c.0.s8 %v2476_v26 }
 0x4b0   : > { %2968 = vrcp.f32 %v2223_v28 }
 0x4b1   : > { %v2951_v16 = vpop.eup %2950  ;;  %2970 = vrcp.f32 %v2224_v53 }
 0x4b2   : > { %v2953_v43 = vpop.eup %2952  ;;  %2972 = vrcp.f32 %v2225_v29  ;;  %v2404_v21 = vmul.f32 %v2951_v16, %v2354_v40 }
 0x4b3   : > { %v2955_v20 = vpop.eup %2954  ;;  %v2405_v34 = vmul.f32 %v2953_v43, %v2354_v40 }
 0x4b4   : > { %v2957_v30 = vpop.eup %2956  ;;  %v2426_v22 = vadd.f32 %v2425_v3, %v2404_v21  ;;  %v2406_v36 = vmul.f32 %v2955_v20, %v2359_v31  ;;  %v2480_v21 = vsub.s32 %v2477_v25, %v3342_v2 }
 0x4b5   : > { %v2959_v52 = vpop.eup %2958  ;;  %v2447_v38 = vadd.f32 %v2446_v6, %v2405_v34  ;;  %v2407_v41 = vmul.f32 %v2957_v30, %v2359_v31  ;;  %v2469_v31 = vrot.slane %v2464_v39, %v487_v5 }
 0x4b6   : > { %v2961_v42 = vpop.eup %2960  ;;  %v2427_v45 = vadd.f32 %v2426_v22, %v2406_v36  ;;  %v2408_v33 = vmul.f32 %v2959_v52, %v2364_v32 }
 0x4b7   : > { %v2963_v46 = vpop.eup %2962  ;;  %v2448_v48 = vadd.f32 %v2447_v38, %v2407_v41  ;;  %v2409_v17 = vmul.f32 %v2961_v42, %v2364_v32 }
 0x4b8   : > { %v2965_v50 = vpop.eup %2964  ;;  %v2428_v54 = vadd.f32 %v2427_v45, %v2408_v33  ;;  %v2412_v57 = vmul.f32 %v2963_v46, %v2374_v47 }
 0x4b9   : > { %v2967_v37 = vpop.eup %2966  ;;  %v2449_v18 = vadd.f32 %v2448_v48, %v2409_v17  ;;  %v2413_v61 = vmul.f32 %v2965_v50, %v2374_v47 }
 0x4ba   : > { %v2969_v56 = vpop.eup %2968  ;;  %v2429_v58 = vadd.f32 %v2428_v54, %v2410_v51  ;;  %v2414_v19 = vmul.f32 %v2967_v37, %v2379_v60 }
 0x4bb   : > { %v2971_v59 = vpop.eup %2970  ;;  %v2450_v62 = vadd.f32 %v2449_v18, %v2411_v55  ;;  %v2415_v3 = vmul.f32 %v2969_v56, %v2379_v60 }
 0x4bc   : > { %v2973_v0 = vpop.eup %2972  ;;  %v2430_v1 = vadd.f32 %v2429_v58, %v2412_v57  ;;  %v2416_v8 = vmul.f32 %v2971_v59, %v2384_v9 }
 0x4bd   : > { %v2451_v4 = vadd.f32 %v2450_v62, %v2413_v61  ;;  %v2417_v7 = vmul.f32 %v2973_v0, %v2384_v9 }
 0x4be   : > { %v2431_v6 = vadd.f32 %v2430_v1, %v2414_v19 }
 0x4bf   : > { %v2452_v10 = vadd.f32 %v2451_v4, %v2415_v3 }
 0x4c0   : > { %v2432_v35 = vadd.f32 %v2431_v6, %v2416_v8 }
 0x4c1   : > { %v2453_v12 = vadd.f32 %v2452_v10, %v2417_v7 }
 0x4c2   : > { %v2433_v11 = vrot.slane %v2432_v35, 4 }
 0x4c3   : > { %v2454_v13 = vrot.slane %v2453_v12, 4 }
 0x4c4   : > { %v2434_v14 = vadd.f32 %v2433_v11, %v2432_v35 }
 0x4c5   : > { %v2455_v15 = vadd.f32 %v2454_v13, %v2453_v12 }
 0x4c6   : > { %v2435_v44 = vrot.slane %v2434_v14, 2 }
 0x4c7   : > { %v2456_v23 = vrot.slane %v2455_v15, 2 }
 0x4c8   : > { %v2436_v40 = vadd.f32 %v2435_v44, %v2434_v14 }
 0x4c9   : > { %v2457_v28 = vadd.f32 %v2456_v23, %v2455_v15 }
 0x4ca   : > { %v2437_v53 = vrot.slane %v2436_v40, 1 }
 0x4cb   : > { %v2458_v29 = vrot.slane %v2457_v28, 1 }
 0x4cc   : > { %v2438_v49 = vadd.f32 %v2437_v53, %v2436_v40 }
 0x4cd   : > { %v2459_v16 = vadd.f32 %v2458_v29, %v2457_v28 }
 0x4ce   : > { %v2470_v32 = vadd.f32 %v2469_v31, %v2438_v49 }
 0x4cf   : > { %v2471_v43 = vadd.f32 %v2469_v31, %v2459_v16 }
 0x4d1   : > { %v2474_v20 = vcombine.low %v2470_v32, %v2471_v43 }
 0x4d3   : > { %v2481_v34 = vrot.slane %v2474_v20, %v2480_v21 }
 0x4d5   : > { %v2488_v30 = vrot.slane %v2481_v34, %v2480_v21 }
 0x4d7   : > { %2494 = vst.msk [vmem:[%s380_s14] sm:$0x3] %vm2492_vm0, %v2488_v30 }
 0x4d8   : > { %2987 = shalt.err (!%p2984_p3)
}
 0x4d9   : > { %s2988_s30 = scalar_lea.hbm %s4093_s18, 32  ;;  %s2992_s16 = scalar_lea.hbm %s4146_s11, 64 }
 0x4da   : > { %p2989_p4 = scmp.ne.s32.totalorder %s4093_s18, %s2988_s30  ;;  %p2993_p9 = scmp.lt.u32.totalorder %s4093_s18, %s4146_s11 }
 0x4db   : > { %p2994_p10 = scmp.lt.u32.totalorder %s2992_s16, %s2988_s30  ;;  %p2996_p12 = scmp.lt.u32.totalorder %s2988_s30, %s4093_s18 }
 0x4dc   : > { %p2990_p7 = pnand %p2989_p4, %p3143_p5 }
 0x4dd   : > { %p2995_p11 = por %p2994_p10, %p2993_p9 }
 0x4de   : > { %p2991_p8 = pneg %p2990_p7 }
 0x4df   : > { %p2997_p13 = por %p2996_p12, %p2995_p11 }
 0x4e1   : > { %p2998_p0 = pnand %p2997_p13, %p2991_p8 }
 0x4e3   : > { %3001 = shalt.err (!%p2998_p0)
}
 0x4e4   : > { %2802 = dma.vmem_to_hbm [thread:$0]  (%p3143_p5), %s4095_s15, 32, %s4093_s18, %s2496_s23  }
 0x4e5 PF: > { %p2808_p1 = scmp.ge.s32.totalorder %s3036_s22, 2  ;;  %s2522_s25 = sand.u32 1, %s3024_s19  }
 0x4e6   : > { %s2523_s26 = scalar_lea.sflag [#allocation4], %s2522_s25 }
 0x4e7   : > { %p2805_p2 = pnand %p2808_p1, %p3147_p6 }
 0x4e9   : > { %3019 = dma.done.wait (!%p2805_p2), %s2523_s26, 32  }
 0x4ea   : > { %3021 = vsyncadd (!%p2805_p2), %s2523_s26, 4294967264  ;;  %p23_p3 = scmp.ge.s32.totalorder %s3130_s24, 4   ;;  %s4149_s19 = smov %s3028_s20 }
 0x4eb   : > { %s4150_s20 = smov %s3032_s21  ;;  %s4151_s21 = smov %s3141_s27 }
 0x4ec   : > { %s4152_s22 = smov %s3130_s24  ;;  %25 = sbr.rel (!%p23_p3) target bundleno = 6 (0x6), region = 99 }
 0x4f3   :  { %2528 = vsyncpa [#allocation4], 1 }
 0x4f4   :  { %2530 = vsyncpa [#allocation4 + $0x1], 1 }

</bundles_post_ra>
